<compile_context>
chip_gen: v7x
topology: tpu7x:2x2x1
jax: 0.10.0
libtpu: 0.0.40
codegen_flags: <defaults>
</compile_context>

<pallas_src>
import math
import jax
import jax.numpy as jnp
import numpy as np
from jax.experimental import pallas as pl
from jax.experimental.pallas import tpu as pltpu

B, S, D, H = 2, 8, 32, 4          # batch, seq, d_model, heads
D_K = D // H
D_FF = 2 * D
EPS = 1e-5                        # InstanceNorm1d default eps
MASK_NEG = -1e9                   # matches masked_fill(mask == 1, -1e9)
CROSS_NEG = -1e30                 # cross-batch block penalty (<< MASK_NEG so a fully
                                  # masked row still renormalizes within its own batch)


def _encoder_layer_kernel(x_ref, smask_ref, gmask_ref,
                          wqkv_ref, bqkv_ref, wo_ref, bo_ref,
                          wf1_ref, bf1_ref, wf2_ref, bf2_ref,
                          out_ref):
    x = x_ref[...]                                   # (B*S, D) = (16, 32)

    def inorm(v):
        # InstanceNorm1d(d_model), affine=False: per-token normalization over
        # d_model, biased variance, eps=1e-5.
        mu = jnp.mean(v, axis=-1, keepdims=True)
        var = jnp.mean((v - mu) * (v - mu), axis=-1, keepdims=True)
        return (v - mu) * jax.lax.rsqrt(var + EPS)

    def dot_nt(a, b):                                # a @ b.T, no explicit transpose
        return jax.lax.dot_general(a, b, (((1,), (1,)), ((), ())),
                                   preferred_element_type=jnp.float32)

    def make_bias(mask_ref):
        # (B*S, B*S) additive bias: per-batch attention mask on the diagonal
        # blocks, large negative penalty on cross-batch blocks.  Computed once
        # per attention branch (hoisted out of the head loop).
        rows = []
        for b in range(B):
            parts = []
            for b2 in range(B):
                if b2 == b:
                    parts.append(
                        jnp.where(mask_ref[b] == 1.0, MASK_NEG, 0.0
                                  ).astype(jnp.float32))
                else:
                    parts.append(jnp.full((S, S), CROSS_NEG, jnp.float32))
            rows.append(jnp.concatenate(parts, axis=1))
        return jnp.concatenate(rows, axis=0)         # (16, 16)

    def attend(q, k, v, bias):
        # q, k, v: (B*S, D); bias: (B*S, B*S).  Static 4-way head loop over
        # 8-lane slices; batch handled by the block-diagonal bias.
        q = q * (1.0 / math.sqrt(D_K))
        outs = []
        for h in range(H):
            lo = h * D_K
            qh = q[:, lo:lo + D_K]                   # (16, 8)
            kh = k[:, lo:lo + D_K]
            vh = v[:, lo:lo + D_K]
            s = dot_nt(qh, kh) + bias                # (16, 16)
            s = s - jnp.max(s, axis=-1, keepdims=True)
            p = jnp.exp(s)
            p = p * pl.reciprocal(jnp.sum(p, axis=-1, keepdims=True),
                                  approx=False)
            outs.append(jnp.dot(p, vh, preferred_element_type=jnp.float32))
        return jnp.concatenate(outs, axis=-1)        # (16, 32)

    # ---- x = x + self_attn(norm_1(x)) + gen_attn(norm_1(x))   (dropout = id)
    x2 = inorm(x)
    qkv = jnp.dot(x2, wqkv_ref[...], preferred_element_type=jnp.float32) \
        + bqkv_ref[...]                              # (16, 192)
    heads1 = attend(qkv[:, 0 * D:1 * D], qkv[:, 1 * D:2 * D], qkv[:, 2 * D:3 * D],
                    make_bias(smask_ref))
    heads2 = attend(qkv[:, 3 * D:4 * D], qkv[:, 4 * D:5 * D], qkv[:, 5 * D:6 * D],
                    make_bias(gmask_ref))
    concat = jnp.concatenate([heads1, heads2], axis=-1)          # (16, 64)
    x = x + jnp.dot(concat, wo_ref[...], preferred_element_type=jnp.float32) \
          + bo_ref[...]

    # ---- x = x + FF(norm_2(x))    (ReLU activation, dropout = id)
    x2 = inorm(x)
    hid = jnp.maximum(
        jnp.dot(x2, wf1_ref[...], preferred_element_type=jnp.float32)
        + bf1_ref[...], 0.0)
    x = x + jnp.dot(hid, wf2_ref[...], preferred_element_type=jnp.float32) \
          + bf2_ref[...]
    out_ref[...] = x


@jax.jit
def encoder_layer_pallas(x, self_mask, gen_mask, params):
    (wq1, bq1, wk1, bk1, wv1, bv1, wo1, bo1,
     wq2, bq2, wk2, bk2, wv2, bv2, wo2, bo2,
     wf1, bf1, wf2, bf2) = params

    # Fuse all six Q/K/V projections (both branches) into one weight, and the
    # two output projections (+ residual sum) into one stacked weight.
    w_qkv = jnp.concatenate([wq1, wk1, wv1, wq2, wk2, wv2], axis=1)   # (32, 192)
    b_qkv = jnp.concatenate([bq1, bk1, bv1, bq2, bk2, bv2], axis=1)   # (1, 192)
    w_o = jnp.concatenate([wo1, wo2], axis=0)                         # (64, 32)
    b_o = bo1 + bo2                                                   # (1, 32)

    x_flat = x.reshape(B * S, D)
    args = (x_flat, self_mask, gen_mask,
            w_qkv, b_qkv, w_o, b_o, wf1, bf1, wf2, bf2)
    out = pl.pallas_call(
        _encoder_layer_kernel,
        out_shape=jax.ShapeDtypeStruct((B * S, D), jnp.float32),
        in_specs=[pl.BlockSpec(memory_space=pltpu.MemorySpace.VMEM)
                  for _ in args],
        out_specs=pl.BlockSpec(memory_space=pltpu.MemorySpace.VMEM),
    )(*args)
    return out.reshape(B, S, D)


# ------------------------- parameter init & reference -------------------------
def _linear_params(key, d_in, d_out):
    kw, kb = jax.random.split(key)
    bound = 1.0 / math.sqrt(d_in)
    w = jax.random.uniform(kw, (d_in, d_out), jnp.float32, -bound, bound)
    b = jax.random.uniform(kb, (1, d_out), jnp.float32, -bound, bound)
    return w, b


def make_params(key):
    keys = jax.random.split(key, 10)
    ps = []
    for i in range(8):                 # self-attn q,k,v,out ; gen-attn q,k,v,out
        w, b = _linear_params(keys[i], D, D)
        ps += [w, b]
    w, b = _linear_params(keys[8], D, D_FF)
    ps += [w, b]
    w, b = _linear_params(keys[9], D_FF, D)
    ps += [w, b]
    return ps


def ref_forward(x, smask, gmask, P):
    (wq1, bq1, wk1, bk1, wv1, bv1, wo1, bo1,
     wq2, bq2, wk2, bk2, wv2, bv2, wo2, bo2,
     wf1, bf1, wf2, bf2) = P

    def inorm(v):
        mu = v.mean(-1, keepdims=True)
        var = ((v - mu) ** 2).mean(-1, keepdims=True)
        return (v - mu) / jnp.sqrt(var + EPS)

    def mha(xn, mask, wq, bq, wk, bk, wv, bv, wo, bo):
        q = (xn @ wq + bq).reshape(B, S, H, D_K).transpose(0, 2, 1, 3)
        k = (xn @ wk + bk).reshape(B, S, H, D_K).transpose(0, 2, 1, 3)
        v = (xn @ wv + bv).reshape(B, S, H, D_K).transpose(0, 2, 1, 3)
        sc = jnp.einsum('bhqd,bhkd->bhqk', q, k) / math.sqrt(D_K)
        sc = jnp.where(mask[:, None] == 1.0, -1e9, sc)
        p = jax.nn.softmax(sc, axis=-1)
        o = jnp.einsum('bhqk,bhkd->bhqd', p, v).transpose(0, 2, 1, 3).reshape(B, S, D)
        return o @ wo + bo

    x2 = inorm(x)
    x = x + mha(x2, smask, wq1, bq1, wk1, bk1, wv1, bv1, wo1, bo1) \
          + mha(x2, gmask, wq2, bq2, wk2, bk2, wv2, bv2, wo2, bo2)
    x2 = inorm(x)
    x = x + (jnp.maximum(x2 @ wf1 + bf1, 0.0) @ wf2 + bf2)
    return x


if __name__ == "__main__":
    key = jax.random.PRNGKey(0)
    kx, km1, km2, kp = jax.random.split(key, 4)

    x = jax.random.normal(kx, (B, S, D), jnp.float32)
    self_mask = (jax.random.uniform(km1, (B, S, S)) < 0.2).astype(jnp.float32)
    gen_mask = (jax.random.uniform(km2, (B, S, S)) < 0.2).astype(jnp.float32)
    # mirror the PyTorch assert: gen_mask must contain both 0 and 1
    gen_mask = gen_mask.at[:, 0, 0].set(1.0).at[:, 0, 1].set(0.0)
    assert float(gen_mask.max()) == 1.0 and float(gen_mask.min()) == 0.0

    params = make_params(kp)

    out = encoder_layer_pallas(x, self_mask, gen_mask, params)
    out = jax.block_until_ready(out)

    ref = ref_forward(x, self_mask, gen_mask, params)
    np.testing.assert_allclose(np.asarray(out), np.asarray(ref), rtol=1e-4, atol=1e-4)

    print("KERNEL_OK")
</pallas_src>

<mosaic_0001>
module attributes {stable_mosaic.version = 11 : i64} {
  func.func @_encoder_layer_kernel(%arg0: memref<16x32xf32, #tpu.memory_space<vmem>>, %arg1: memref<2x8x8xf32, #tpu.memory_space<vmem>>, %arg2: memref<2x8x8xf32, #tpu.memory_space<vmem>>, %arg3: memref<32x192xf32, #tpu.memory_space<vmem>>, %arg4: memref<1x192xf32, #tpu.memory_space<vmem>>, %arg5: memref<64x32xf32, #tpu.memory_space<vmem>>, %arg6: memref<1x32xf32, #tpu.memory_space<vmem>>, %arg7: memref<32x64xf32, #tpu.memory_space<vmem>>, %arg8: memref<1x64xf32, #tpu.memory_space<vmem>>, %arg9: memref<64x32xf32, #tpu.memory_space<vmem>>, %arg10: memref<1x32xf32, #tpu.memory_space<vmem>>, %arg11: memref<16x32xf32, #tpu.memory_space<vmem>>) attributes {dimension_semantics = [], scalar_prefetch = 0 : i64, scratch_operands = 0 : i64, tpu.core_type = #tpu.core_type<tc>} {
    %c0 = arith.constant 0 : index
    %c0_0 = arith.constant 0 : index
    %0 = vector.load %arg0[%c0, %c0_0] : memref<16x32xf32, #tpu.memory_space<vmem>>, vector<16x32xf32>
    %cst = arith.constant dense<0.000000e+00> : vector<16xf32>
    %1 = vector.multi_reduction <add>, %0, %cst [1] : vector<16x32xf32> to vector<16xf32>
    %2 = vector.shape_cast %1 : vector<16xf32> to vector<16x1xf32>
    %cst_1 = arith.constant 3.200000e+01 : f32
    %3 = vector.broadcast %cst_1 : f32 to vector<16x1xf32>
    %4 = arith.divf %2, %3 : vector<16x1xf32>
    %5 = vector.broadcast %4 : vector<16x1xf32> to vector<16x32xf32>
    %6 = arith.subf %0, %5 : vector<16x32xf32>
    %7 = vector.broadcast %4 : vector<16x1xf32> to vector<16x32xf32>
    %8 = arith.subf %0, %7 : vector<16x32xf32>
    %9 = arith.mulf %6, %8 : vector<16x32xf32>
    %cst_2 = arith.constant dense<0.000000e+00> : vector<16xf32>
    %10 = vector.multi_reduction <add>, %9, %cst_2 [1] : vector<16x32xf32> to vector<16xf32>
    %11 = vector.shape_cast %10 : vector<16xf32> to vector<16x1xf32>
    %cst_3 = arith.constant 3.200000e+01 : f32
    %12 = vector.broadcast %cst_3 : f32 to vector<16x1xf32>
    %13 = arith.divf %11, %12 : vector<16x1xf32>
    %14 = vector.broadcast %4 : vector<16x1xf32> to vector<16x32xf32>
    %15 = arith.subf %0, %14 : vector<16x32xf32>
    %cst_4 = arith.constant 9.99999974E-6 : f32
    %16 = vector.broadcast %cst_4 : f32 to vector<16x1xf32>
    %17 = arith.addf %13, %16 : vector<16x1xf32>
    %18 = math.rsqrt %17 : vector<16x1xf32>
    %19 = vector.broadcast %18 : vector<16x1xf32> to vector<16x32xf32>
    %20 = arith.mulf %15, %19 : vector<16x32xf32>
    %c0_5 = arith.constant 0 : index
    %c0_6 = arith.constant 0 : index
    %21 = vector.load %arg3[%c0_5, %c0_6] : memref<32x192xf32, #tpu.memory_space<vmem>>, vector<32x192xf32>
    %cst_7 = arith.constant dense<0.000000e+00> : vector<16x192xf32>
    %22 = tpu.matmul %20, %21, %cst_7 {dimension_numbers = #tpu.dot_dimension_numbers<[1], [0], [0], [1], [0, 0, 1, 1], [], []>} : vector<16x32xf32>, vector<32x192xf32>, vector<16x192xf32> -> vector<16x192xf32>
    %c0_8 = arith.constant 0 : index
    %c0_9 = arith.constant 0 : index
    %23 = vector.load %arg4[%c0_8, %c0_9] : memref<1x192xf32, #tpu.memory_space<vmem>>, vector<1x192xf32>
    %24 = vector.broadcast %23 : vector<1x192xf32> to vector<16x192xf32>
    %25 = arith.addf %22, %24 : vector<16x192xf32>
    %26 = vector.extract_strided_slice %25 {offsets = [0, 0], sizes = [16, 32], strides = [1, 1]} : vector<16x192xf32> to vector<16x32xf32>
    %27 = vector.extract_strided_slice %25 {offsets = [0, 32], sizes = [16, 32], strides = [1, 1]} : vector<16x192xf32> to vector<16x32xf32>
    %28 = vector.extract_strided_slice %25 {offsets = [0, 64], sizes = [16, 32], strides = [1, 1]} : vector<16x192xf32> to vector<16x32xf32>
    %c0_10 = arith.constant 0 : index
    %c0_11 = arith.constant 0 : index
    %c0_12 = arith.constant 0 : index
    %29 = vector.load %arg1[%c0_10, %c0_11, %c0_12] : memref<2x8x8xf32, #tpu.memory_space<vmem>>, vector<1x8x8xf32>
    %30 = vector.shape_cast %29 : vector<1x8x8xf32> to vector<8x8xf32>
    %cst_13 = arith.constant 1.000000e+00 : f32
    %31 = vector.broadcast %cst_13 : f32 to vector<8x8xf32>
    %32 = arith.cmpf oeq, %30, %31 : vector<8x8xf32>
    %cst_14 = arith.constant -1.000000e+09 : f32
    %cst_15 = arith.constant 0.000000e+00 : f32
    %33 = vector.broadcast %cst_14 : f32 to vector<8x8xf32>
    %34 = vector.broadcast %cst_15 : f32 to vector<8x8xf32>
    %35 = arith.select %32, %33, %34 : vector<8x8xi1>, vector<8x8xf32>
    %cst_16 = arith.constant -1.000000e+30 : f32
    %36 = vector.broadcast %cst_16 : f32 to vector<8x8xf32>
    %37 = tpu.concatenate %35, %36 in 1 : vector<8x8xf32>, vector<8x8xf32> -> vector<8x16xf32>
    %cst_17 = arith.constant -1.000000e+30 : f32
    %38 = vector.broadcast %cst_17 : f32 to vector<8x8xf32>
    %c1 = arith.constant 1 : index
    %c0_18 = arith.constant 0 : index
    %c0_19 = arith.constant 0 : index
    %39 = vector.load %arg1[%c1, %c0_18, %c0_19] : memref<2x8x8xf32, #tpu.memory_space<vmem>>, vector<1x8x8xf32>
    %40 = vector.shape_cast %39 : vector<1x8x8xf32> to vector<8x8xf32>
    %cst_20 = arith.constant 1.000000e+00 : f32
    %41 = vector.broadcast %cst_20 : f32 to vector<8x8xf32>
    %42 = arith.cmpf oeq, %40, %41 : vector<8x8xf32>
    %cst_21 = arith.constant -1.000000e+09 : f32
    %cst_22 = arith.constant 0.000000e+00 : f32
    %43 = vector.broadcast %cst_21 : f32 to vector<8x8xf32>
    %44 = vector.broadcast %cst_22 : f32 to vector<8x8xf32>
    %45 = arith.select %42, %43, %44 : vector<8x8xi1>, vector<8x8xf32>
    %46 = tpu.concatenate %38, %45 in 1 : vector<8x8xf32>, vector<8x8xf32> -> vector<8x16xf32>
    %47 = tpu.concatenate %37, %46 in 0 : vector<8x16xf32>, vector<8x16xf32> -> vector<16x16xf32>
    %cst_23 = arith.constant 0.353553385 : f32
    %48 = vector.broadcast %cst_23 : f32 to vector<16x32xf32>
    %49 = arith.mulf %26, %48 : vector<16x32xf32>
    %50 = vector.extract_strided_slice %49 {offsets = [0, 0], sizes = [16, 8], strides = [1, 1]} : vector<16x32xf32> to vector<16x8xf32>
    %51 = vector.extract_strided_slice %27 {offsets = [0, 0], sizes = [16, 8], strides = [1, 1]} : vector<16x32xf32> to vector<16x8xf32>
    %52 = vector.extract_strided_slice %28 {offsets = [0, 0], sizes = [16, 8], strides = [1, 1]} : vector<16x32xf32> to vector<16x8xf32>
    %cst_24 = arith.constant dense<0.000000e+00> : vector<16x16xf32>
    %53 = tpu.matmul %50, %51, %cst_24 {dimension_numbers = #tpu.dot_dimension_numbers<[1], [1], [0], [0], [0, 0, 1, 0], [], []>} : vector<16x8xf32>, vector<16x8xf32>, vector<16x16xf32> -> vector<16x16xf32>
    %54 = arith.addf %53, %47 : vector<16x16xf32>
    %cst_25 = arith.constant dense<0xFF800000> : vector<16xf32>
    %55 = vector.multi_reduction <maximumf>, %54, %cst_25 [1] : vector<16x16xf32> to vector<16xf32>
    %56 = vector.shape_cast %55 : vector<16xf32> to vector<16x1xf32>
    %57 = vector.broadcast %56 : vector<16x1xf32> to vector<16x16xf32>
    %58 = arith.subf %54, %57 : vector<16x16xf32>
    %59 = math.exp %58 : vector<16x16xf32>
    %cst_26 = arith.constant dense<0.000000e+00> : vector<16xf32>
    %60 = vector.multi_reduction <add>, %59, %cst_26 [1] : vector<16x16xf32> to vector<16xf32>
    %61 = vector.shape_cast %60 : vector<16xf32> to vector<16x1xf32>
    %62 = tpu.reciprocal %61 : vector<16x1xf32> -> vector<16x1xf32>
    %63 = vector.broadcast %62 : vector<16x1xf32> to vector<16x16xf32>
    %64 = arith.mulf %59, %63 : vector<16x16xf32>
    %cst_27 = arith.constant dense<0.000000e+00> : vector<16x8xf32>
    %65 = tpu.matmul %64, %52, %cst_27 {dimension_numbers = #tpu.dot_dimension_numbers<[1], [0], [0], [1], [0, 0, 1, 1], [], []>} : vector<16x16xf32>, vector<16x8xf32>, vector<16x8xf32> -> vector<16x8xf32>
    %66 = vector.extract_strided_slice %49 {offsets = [0, 8], sizes = [16, 8], strides = [1, 1]} : vector<16x32xf32> to vector<16x8xf32>
    %67 = vector.extract_strided_slice %27 {offsets = [0, 8], sizes = [16, 8], strides = [1, 1]} : vector<16x32xf32> to vector<16x8xf32>
    %68 = vector.extract_strided_slice %28 {offsets = [0, 8], sizes = [16, 8], strides = [1, 1]} : vector<16x32xf32> to vector<16x8xf32>
    %cst_28 = arith.constant dense<0.000000e+00> : vector<16x16xf32>
    %69 = tpu.matmul %66, %67, %cst_28 {dimension_numbers = #tpu.dot_dimension_numbers<[1], [1], [0], [0], [0, 0, 1, 0], [], []>} : vector<16x8xf32>, vector<16x8xf32>, vector<16x16xf32> -> vector<16x16xf32>
    %70 = arith.addf %69, %47 : vector<16x16xf32>
    %cst_29 = arith.constant dense<0xFF800000> : vector<16xf32>
    %71 = vector.multi_reduction <maximumf>, %70, %cst_29 [1] : vector<16x16xf32> to vector<16xf32>
    %72 = vector.shape_cast %71 : vector<16xf32> to vector<16x1xf32>
    %73 = vector.broadcast %72 : vector<16x1xf32> to vector<16x16xf32>
    %74 = arith.subf %70, %73 : vector<16x16xf32>
    %75 = math.exp %74 : vector<16x16xf32>
    %cst_30 = arith.constant dense<0.000000e+00> : vector<16xf32>
    %76 = vector.multi_reduction <add>, %75, %cst_30 [1] : vector<16x16xf32> to vector<16xf32>
    %77 = vector.shape_cast %76 : vector<16xf32> to vector<16x1xf32>
    %78 = tpu.reciprocal %77 : vector<16x1xf32> -> vector<16x1xf32>
    %79 = vector.broadcast %78 : vector<16x1xf32> to vector<16x16xf32>
    %80 = arith.mulf %75, %79 : vector<16x16xf32>
    %cst_31 = arith.constant dense<0.000000e+00> : vector<16x8xf32>
    %81 = tpu.matmul %80, %68, %cst_31 {dimension_numbers = #tpu.dot_dimension_numbers<[1], [0], [0], [1], [0, 0, 1, 1], [], []>} : vector<16x16xf32>, vector<16x8xf32>, vector<16x8xf32> -> vector<16x8xf32>
    %82 = vector.extract_strided_slice %49 {offsets = [0, 16], sizes = [16, 8], strides = [1, 1]} : vector<16x32xf32> to vector<16x8xf32>
    %83 = vector.extract_strided_slice %27 {offsets = [0, 16], sizes = [16, 8], strides = [1, 1]} : vector<16x32xf32> to vector<16x8xf32>
    %84 = vector.extract_strided_slice %28 {offsets = [0, 16], sizes = [16, 8], strides = [1, 1]} : vector<16x32xf32> to vector<16x8xf32>
    %cst_32 = arith.constant dense<0.000000e+00> : vector<16x16xf32>
    %85 = tpu.matmul %82, %83, %cst_32 {dimension_numbers = #tpu.dot_dimension_numbers<[1], [1], [0], [0], [0, 0, 1, 0], [], []>} : vector<16x8xf32>, vector<16x8xf32>, vector<16x16xf32> -> vector<16x16xf32>
    %86 = arith.addf %85, %47 : vector<16x16xf32>
    %cst_33 = arith.constant dense<0xFF800000> : vector<16xf32>
    %87 = vector.multi_reduction <maximumf>, %86, %cst_33 [1] : vector<16x16xf32> to vector<16xf32>
    %88 = vector.shape_cast %87 : vector<16xf32> to vector<16x1xf32>
    %89 = vector.broadcast %88 : vector<16x1xf32> to vector<16x16xf32>
    %90 = arith.subf %86, %89 : vector<16x16xf32>
    %91 = math.exp %90 : vector<16x16xf32>
    %cst_34 = arith.constant dense<0.000000e+00> : vector<16xf32>
    %92 = vector.multi_reduction <add>, %91, %cst_34 [1] : vector<16x16xf32> to vector<16xf32>
    %93 = vector.shape_cast %92 : vector<16xf32> to vector<16x1xf32>
    %94 = tpu.reciprocal %93 : vector<16x1xf32> -> vector<16x1xf32>
    %95 = vector.broadcast %94 : vector<16x1xf32> to vector<16x16xf32>
    %96 = arith.mulf %91, %95 : vector<16x16xf32>
    %cst_35 = arith.constant dense<0.000000e+00> : vector<16x8xf32>
    %97 = tpu.matmul %96, %84, %cst_35 {dimension_numbers = #tpu.dot_dimension_numbers<[1], [0], [0], [1], [0, 0, 1, 1], [], []>} : vector<16x16xf32>, vector<16x8xf32>, vector<16x8xf32> -> vector<16x8xf32>
    %98 = vector.extract_strided_slice %49 {offsets = [0, 24], sizes = [16, 8], strides = [1, 1]} : vector<16x32xf32> to vector<16x8xf32>
    %99 = vector.extract_strided_slice %27 {offsets = [0, 24], sizes = [16, 8], strides = [1, 1]} : vector<16x32xf32> to vector<16x8xf32>
    %100 = vector.extract_strided_slice %28 {offsets = [0, 24], sizes = [16, 8], strides = [1, 1]} : vector<16x32xf32> to vector<16x8xf32>
    %cst_36 = arith.constant dense<0.000000e+00> : vector<16x16xf32>
    %101 = tpu.matmul %98, %99, %cst_36 {dimension_numbers = #tpu.dot_dimension_numbers<[1], [1], [0], [0], [0, 0, 1, 0], [], []>} : vector<16x8xf32>, vector<16x8xf32>, vector<16x16xf32> -> vector<16x16xf32>
    %102 = arith.addf %101, %47 : vector<16x16xf32>
    %cst_37 = arith.constant dense<0xFF800000> : vector<16xf32>
    %103 = vector.multi_reduction <maximumf>, %102, %cst_37 [1] : vector<16x16xf32> to vector<16xf32>
    %104 = vector.shape_cast %103 : vector<16xf32> to vector<16x1xf32>
    %105 = vector.broadcast %104 : vector<16x1xf32> to vector<16x16xf32>
    %106 = arith.subf %102, %105 : vector<16x16xf32>
    %107 = math.exp %106 : vector<16x16xf32>
    %cst_38 = arith.constant dense<0.000000e+00> : vector<16xf32>
    %108 = vector.multi_reduction <add>, %107, %cst_38 [1] : vector<16x16xf32> to vector<16xf32>
    %109 = vector.shape_cast %108 : vector<16xf32> to vector<16x1xf32>
    %110 = tpu.reciprocal %109 : vector<16x1xf32> -> vector<16x1xf32>
    %111 = vector.broadcast %110 : vector<16x1xf32> to vector<16x16xf32>
    %112 = arith.mulf %107, %111 : vector<16x16xf32>
    %cst_39 = arith.constant dense<0.000000e+00> : vector<16x8xf32>
    %113 = tpu.matmul %112, %100, %cst_39 {dimension_numbers = #tpu.dot_dimension_numbers<[1], [0], [0], [1], [0, 0, 1, 1], [], []>} : vector<16x16xf32>, vector<16x8xf32>, vector<16x8xf32> -> vector<16x8xf32>
    %114 = tpu.concatenate %65, %81, %97, %113 in 1 : vector<16x8xf32>, vector<16x8xf32>, vector<16x8xf32>, vector<16x8xf32> -> vector<16x32xf32>
    %115 = vector.extract_strided_slice %25 {offsets = [0, 96], sizes = [16, 32], strides = [1, 1]} : vector<16x192xf32> to vector<16x32xf32>
    %116 = vector.extract_strided_slice %25 {offsets = [0, 128], sizes = [16, 32], strides = [1, 1]} : vector<16x192xf32> to vector<16x32xf32>
    %117 = vector.extract_strided_slice %25 {offsets = [0, 160], sizes = [16, 32], strides = [1, 1]} : vector<16x192xf32> to vector<16x32xf32>
    %c0_40 = arith.constant 0 : index
    %c0_41 = arith.constant 0 : index
    %c0_42 = arith.constant 0 : index
    %118 = vector.load %arg2[%c0_40, %c0_41, %c0_42] : memref<2x8x8xf32, #tpu.memory_space<vmem>>, vector<1x8x8xf32>
    %119 = vector.shape_cast %118 : vector<1x8x8xf32> to vector<8x8xf32>
    %cst_43 = arith.constant 1.000000e+00 : f32
    %120 = vector.broadcast %cst_43 : f32 to vector<8x8xf32>
    %121 = arith.cmpf oeq, %119, %120 : vector<8x8xf32>
    %cst_44 = arith.constant -1.000000e+09 : f32
    %cst_45 = arith.constant 0.000000e+00 : f32
    %122 = vector.broadcast %cst_44 : f32 to vector<8x8xf32>
    %123 = vector.broadcast %cst_45 : f32 to vector<8x8xf32>
    %124 = arith.select %121, %122, %123 : vector<8x8xi1>, vector<8x8xf32>
    %cst_46 = arith.constant -1.000000e+30 : f32
    %125 = vector.broadcast %cst_46 : f32 to vector<8x8xf32>
    %126 = tpu.concatenate %124, %125 in 1 : vector<8x8xf32>, vector<8x8xf32> -> vector<8x16xf32>
    %cst_47 = arith.constant -1.000000e+30 : f32
    %127 = vector.broadcast %cst_47 : f32 to vector<8x8xf32>
    %c1_48 = arith.constant 1 : index
    %c0_49 = arith.constant 0 : index
    %c0_50 = arith.constant 0 : index
    %128 = vector.load %arg2[%c1_48, %c0_49, %c0_50] : memref<2x8x8xf32, #tpu.memory_space<vmem>>, vector<1x8x8xf32>
    %129 = vector.shape_cast %128 : vector<1x8x8xf32> to vector<8x8xf32>
    %cst_51 = arith.constant 1.000000e+00 : f32
    %130 = vector.broadcast %cst_51 : f32 to vector<8x8xf32>
    %131 = arith.cmpf oeq, %129, %130 : vector<8x8xf32>
    %cst_52 = arith.constant -1.000000e+09 : f32
    %cst_53 = arith.constant 0.000000e+00 : f32
    %132 = vector.broadcast %cst_52 : f32 to vector<8x8xf32>
    %133 = vector.broadcast %cst_53 : f32 to vector<8x8xf32>
    %134 = arith.select %131, %132, %133 : vector<8x8xi1>, vector<8x8xf32>
    %135 = tpu.concatenate %127, %134 in 1 : vector<8x8xf32>, vector<8x8xf32> -> vector<8x16xf32>
    %136 = tpu.concatenate %126, %135 in 0 : vector<8x16xf32>, vector<8x16xf32> -> vector<16x16xf32>
    %cst_54 = arith.constant 0.353553385 : f32
    %137 = vector.broadcast %cst_54 : f32 to vector<16x32xf32>
    %138 = arith.mulf %115, %137 : vector<16x32xf32>
    %139 = vector.extract_strided_slice %138 {offsets = [0, 0], sizes = [16, 8], strides = [1, 1]} : vector<16x32xf32> to vector<16x8xf32>
    %140 = vector.extract_strided_slice %116 {offsets = [0, 0], sizes = [16, 8], strides = [1, 1]} : vector<16x32xf32> to vector<16x8xf32>
    %141 = vector.extract_strided_slice %117 {offsets = [0, 0], sizes = [16, 8], strides = [1, 1]} : vector<16x32xf32> to vector<16x8xf32>
    %cst_55 = arith.constant dense<0.000000e+00> : vector<16x16xf32>
    %142 = tpu.matmul %139, %140, %cst_55 {dimension_numbers = #tpu.dot_dimension_numbers<[1], [1], [0], [0], [0, 0, 1, 0], [], []>} : vector<16x8xf32>, vector<16x8xf32>, vector<16x16xf32> -> vector<16x16xf32>
    %143 = arith.addf %142, %136 : vector<16x16xf32>
    %cst_56 = arith.constant dense<0xFF800000> : vector<16xf32>
    %144 = vector.multi_reduction <maximumf>, %143, %cst_56 [1] : vector<16x16xf32> to vector<16xf32>
    %145 = vector.shape_cast %144 : vector<16xf32> to vector<16x1xf32>
    %146 = vector.broadcast %145 : vector<16x1xf32> to vector<16x16xf32>
    %147 = arith.subf %143, %146 : vector<16x16xf32>
    %148 = math.exp %147 : vector<16x16xf32>
    %cst_57 = arith.constant dense<0.000000e+00> : vector<16xf32>
    %149 = vector.multi_reduction <add>, %148, %cst_57 [1] : vector<16x16xf32> to vector<16xf32>
    %150 = vector.shape_cast %149 : vector<16xf32> to vector<16x1xf32>
    %151 = tpu.reciprocal %150 : vector<16x1xf32> -> vector<16x1xf32>
    %152 = vector.broadcast %151 : vector<16x1xf32> to vector<16x16xf32>
    %153 = arith.mulf %148, %152 : vector<16x16xf32>
    %cst_58 = arith.constant dense<0.000000e+00> : vector<16x8xf32>
    %154 = tpu.matmul %153, %141, %cst_58 {dimension_numbers = #tpu.dot_dimension_numbers<[1], [0], [0], [1], [0, 0, 1, 1], [], []>} : vector<16x16xf32>, vector<16x8xf32>, vector<16x8xf32> -> vector<16x8xf32>
    %155 = vector.extract_strided_slice %138 {offsets = [0, 8], sizes = [16, 8], strides = [1, 1]} : vector<16x32xf32> to vector<16x8xf32>
    %156 = vector.extract_strided_slice %116 {offsets = [0, 8], sizes = [16, 8], strides = [1, 1]} : vector<16x32xf32> to vector<16x8xf32>
    %157 = vector.extract_strided_slice %117 {offsets = [0, 8], sizes = [16, 8], strides = [1, 1]} : vector<16x32xf32> to vector<16x8xf32>
    %cst_59 = arith.constant dense<0.000000e+00> : vector<16x16xf32>
    %158 = tpu.matmul %155, %156, %cst_59 {dimension_numbers = #tpu.dot_dimension_numbers<[1], [1], [0], [0], [0, 0, 1, 0], [], []>} : vector<16x8xf32>, vector<16x8xf32>, vector<16x16xf32> -> vector<16x16xf32>
    %159 = arith.addf %158, %136 : vector<16x16xf32>
    %cst_60 = arith.constant dense<0xFF800000> : vector<16xf32>
    %160 = vector.multi_reduction <maximumf>, %159, %cst_60 [1] : vector<16x16xf32> to vector<16xf32>
    %161 = vector.shape_cast %160 : vector<16xf32> to vector<16x1xf32>
    %162 = vector.broadcast %161 : vector<16x1xf32> to vector<16x16xf32>
    %163 = arith.subf %159, %162 : vector<16x16xf32>
    %164 = math.exp %163 : vector<16x16xf32>
    %cst_61 = arith.constant dense<0.000000e+00> : vector<16xf32>
    %165 = vector.multi_reduction <add>, %164, %cst_61 [1] : vector<16x16xf32> to vector<16xf32>
    %166 = vector.shape_cast %165 : vector<16xf32> to vector<16x1xf32>
    %167 = tpu.reciprocal %166 : vector<16x1xf32> -> vector<16x1xf32>
    %168 = vector.broadcast %167 : vector<16x1xf32> to vector<16x16xf32>
    %169 = arith.mulf %164, %168 : vector<16x16xf32>
    %cst_62 = arith.constant dense<0.000000e+00> : vector<16x8xf32>
    %170 = tpu.matmul %169, %157, %cst_62 {dimension_numbers = #tpu.dot_dimension_numbers<[1], [0], [0], [1], [0, 0, 1, 1], [], []>} : vector<16x16xf32>, vector<16x8xf32>, vector<16x8xf32> -> vector<16x8xf32>
    %171 = vector.extract_strided_slice %138 {offsets = [0, 16], sizes = [16, 8], strides = [1, 1]} : vector<16x32xf32> to vector<16x8xf32>
    %172 = vector.extract_strided_slice %116 {offsets = [0, 16], sizes = [16, 8], strides = [1, 1]} : vector<16x32xf32> to vector<16x8xf32>
    %173 = vector.extract_strided_slice %117 {offsets = [0, 16], sizes = [16, 8], strides = [1, 1]} : vector<16x32xf32> to vector<16x8xf32>
    %cst_63 = arith.constant dense<0.000000e+00> : vector<16x16xf32>
    %174 = tpu.matmul %171, %172, %cst_63 {dimension_numbers = #tpu.dot_dimension_numbers<[1], [1], [0], [0], [0, 0, 1, 0], [], []>} : vector<16x8xf32>, vector<16x8xf32>, vector<16x16xf32> -> vector<16x16xf32>
    %175 = arith.addf %174, %136 : vector<16x16xf32>
    %cst_64 = arith.constant dense<0xFF800000> : vector<16xf32>
    %176 = vector.multi_reduction <maximumf>, %175, %cst_64 [1] : vector<16x16xf32> to vector<16xf32>
    %177 = vector.shape_cast %176 : vector<16xf32> to vector<16x1xf32>
    %178 = vector.broadcast %177 : vector<16x1xf32> to vector<16x16xf32>
    %179 = arith.subf %175, %178 : vector<16x16xf32>
    %180 = math.exp %179 : vector<16x16xf32>
    %cst_65 = arith.constant dense<0.000000e+00> : vector<16xf32>
    %181 = vector.multi_reduction <add>, %180, %cst_65 [1] : vector<16x16xf32> to vector<16xf32>
    %182 = vector.shape_cast %181 : vector<16xf32> to vector<16x1xf32>
    %183 = tpu.reciprocal %182 : vector<16x1xf32> -> vector<16x1xf32>
    %184 = vector.broadcast %183 : vector<16x1xf32> to vector<16x16xf32>
    %185 = arith.mulf %180, %184 : vector<16x16xf32>
    %cst_66 = arith.constant dense<0.000000e+00> : vector<16x8xf32>
    %186 = tpu.matmul %185, %173, %cst_66 {dimension_numbers = #tpu.dot_dimension_numbers<[1], [0], [0], [1], [0, 0, 1, 1], [], []>} : vector<16x16xf32>, vector<16x8xf32>, vector<16x8xf32> -> vector<16x8xf32>
    %187 = vector.extract_strided_slice %138 {offsets = [0, 24], sizes = [16, 8], strides = [1, 1]} : vector<16x32xf32> to vector<16x8xf32>
    %188 = vector.extract_strided_slice %116 {offsets = [0, 24], sizes = [16, 8], strides = [1, 1]} : vector<16x32xf32> to vector<16x8xf32>
    %189 = vector.extract_strided_slice %117 {offsets = [0, 24], sizes = [16, 8], strides = [1, 1]} : vector<16x32xf32> to vector<16x8xf32>
    %cst_67 = arith.constant dense<0.000000e+00> : vector<16x16xf32>
    %190 = tpu.matmul %187, %188, %cst_67 {dimension_numbers = #tpu.dot_dimension_numbers<[1], [1], [0], [0], [0, 0, 1, 0], [], []>} : vector<16x8xf32>, vector<16x8xf32>, vector<16x16xf32> -> vector<16x16xf32>
    %191 = arith.addf %190, %136 : vector<16x16xf32>
    %cst_68 = arith.constant dense<0xFF800000> : vector<16xf32>
    %192 = vector.multi_reduction <maximumf>, %191, %cst_68 [1] : vector<16x16xf32> to vector<16xf32>
    %193 = vector.shape_cast %192 : vector<16xf32> to vector<16x1xf32>
    %194 = vector.broadcast %193 : vector<16x1xf32> to vector<16x16xf32>
    %195 = arith.subf %191, %194 : vector<16x16xf32>
    %196 = math.exp %195 : vector<16x16xf32>
    %cst_69 = arith.constant dense<0.000000e+00> : vector<16xf32>
    %197 = vector.multi_reduction <add>, %196, %cst_69 [1] : vector<16x16xf32> to vector<16xf32>
    %198 = vector.shape_cast %197 : vector<16xf32> to vector<16x1xf32>
    %199 = tpu.reciprocal %198 : vector<16x1xf32> -> vector<16x1xf32>
    %200 = vector.broadcast %199 : vector<16x1xf32> to vector<16x16xf32>
    %201 = arith.mulf %196, %200 : vector<16x16xf32>
    %cst_70 = arith.constant dense<0.000000e+00> : vector<16x8xf32>
    %202 = tpu.matmul %201, %189, %cst_70 {dimension_numbers = #tpu.dot_dimension_numbers<[1], [0], [0], [1], [0, 0, 1, 1], [], []>} : vector<16x16xf32>, vector<16x8xf32>, vector<16x8xf32> -> vector<16x8xf32>
    %203 = tpu.concatenate %154, %170, %186, %202 in 1 : vector<16x8xf32>, vector<16x8xf32>, vector<16x8xf32>, vector<16x8xf32> -> vector<16x32xf32>
    %204 = tpu.concatenate %114, %203 in 1 : vector<16x32xf32>, vector<16x32xf32> -> vector<16x64xf32>
    %c0_71 = arith.constant 0 : index
    %c0_72 = arith.constant 0 : index
    %205 = vector.load %arg5[%c0_71, %c0_72] : memref<64x32xf32, #tpu.memory_space<vmem>>, vector<64x32xf32>
    %cst_73 = arith.constant dense<0.000000e+00> : vector<16x32xf32>
    %206 = tpu.matmul %204, %205, %cst_73 {dimension_numbers = #tpu.dot_dimension_numbers<[1], [0], [0], [1], [0, 0, 1, 1], [], []>} : vector<16x64xf32>, vector<64x32xf32>, vector<16x32xf32> -> vector<16x32xf32>
    %207 = arith.addf %0, %206 : vector<16x32xf32>
    %c0_74 = arith.constant 0 : index
    %c0_75 = arith.constant 0 : index
    %208 = vector.load %arg6[%c0_74, %c0_75] : memref<1x32xf32, #tpu.memory_space<vmem>>, vector<1x32xf32>
    %209 = vector.broadcast %208 : vector<1x32xf32> to vector<16x32xf32>
    %210 = arith.addf %207, %209 : vector<16x32xf32>
    %cst_76 = arith.constant dense<0.000000e+00> : vector<16xf32>
    %211 = vector.multi_reduction <add>, %210, %cst_76 [1] : vector<16x32xf32> to vector<16xf32>
    %212 = vector.shape_cast %211 : vector<16xf32> to vector<16x1xf32>
    %cst_77 = arith.constant 3.200000e+01 : f32
    %213 = vector.broadcast %cst_77 : f32 to vector<16x1xf32>
    %214 = arith.divf %212, %213 : vector<16x1xf32>
    %215 = vector.broadcast %214 : vector<16x1xf32> to vector<16x32xf32>
    %216 = arith.subf %210, %215 : vector<16x32xf32>
    %217 = vector.broadcast %214 : vector<16x1xf32> to vector<16x32xf32>
    %218 = arith.subf %210, %217 : vector<16x32xf32>
    %219 = arith.mulf %216, %218 : vector<16x32xf32>
    %cst_78 = arith.constant dense<0.000000e+00> : vector<16xf32>
    %220 = vector.multi_reduction <add>, %219, %cst_78 [1] : vector<16x32xf32> to vector<16xf32>
    %221 = vector.shape_cast %220 : vector<16xf32> to vector<16x1xf32>
    %cst_79 = arith.constant 3.200000e+01 : f32
    %222 = vector.broadcast %cst_79 : f32 to vector<16x1xf32>
    %223 = arith.divf %221, %222 : vector<16x1xf32>
    %224 = vector.broadcast %214 : vector<16x1xf32> to vector<16x32xf32>
    %225 = arith.subf %210, %224 : vector<16x32xf32>
    %cst_80 = arith.constant 9.99999974E-6 : f32
    %226 = vector.broadcast %cst_80 : f32 to vector<16x1xf32>
    %227 = arith.addf %223, %226 : vector<16x1xf32>
    %228 = math.rsqrt %227 : vector<16x1xf32>
    %229 = vector.broadcast %228 : vector<16x1xf32> to vector<16x32xf32>
    %230 = arith.mulf %225, %229 : vector<16x32xf32>
    %c0_81 = arith.constant 0 : index
    %c0_82 = arith.constant 0 : index
    %231 = vector.load %arg7[%c0_81, %c0_82] : memref<32x64xf32, #tpu.memory_space<vmem>>, vector<32x64xf32>
    %cst_83 = arith.constant dense<0.000000e+00> : vector<16x64xf32>
    %232 = tpu.matmul %230, %231, %cst_83 {dimension_numbers = #tpu.dot_dimension_numbers<[1], [0], [0], [1], [0, 0, 1, 1], [], []>} : vector<16x32xf32>, vector<32x64xf32>, vector<16x64xf32> -> vector<16x64xf32>
    %c0_84 = arith.constant 0 : index
    %c0_85 = arith.constant 0 : index
    %233 = vector.load %arg8[%c0_84, %c0_85] : memref<1x64xf32, #tpu.memory_space<vmem>>, vector<1x64xf32>
    %234 = vector.broadcast %233 : vector<1x64xf32> to vector<16x64xf32>
    %235 = arith.addf %232, %234 : vector<16x64xf32>
    %cst_86 = arith.constant 0.000000e+00 : f32
    %236 = vector.broadcast %cst_86 : f32 to vector<16x64xf32>
    %237 = arith.maximumf %235, %236 : vector<16x64xf32>
    %c0_87 = arith.constant 0 : index
    %c0_88 = arith.constant 0 : index
    %238 = vector.load %arg9[%c0_87, %c0_88] : memref<64x32xf32, #tpu.memory_space<vmem>>, vector<64x32xf32>
    %cst_89 = arith.constant dense<0.000000e+00> : vector<16x32xf32>
    %239 = tpu.matmul %237, %238, %cst_89 {dimension_numbers = #tpu.dot_dimension_numbers<[1], [0], [0], [1], [0, 0, 1, 1], [], []>} : vector<16x64xf32>, vector<64x32xf32>, vector<16x32xf32> -> vector<16x32xf32>
    %240 = arith.addf %210, %239 : vector<16x32xf32>
    %c0_90 = arith.constant 0 : index
    %c0_91 = arith.constant 0 : index
    %241 = vector.load %arg10[%c0_90, %c0_91] : memref<1x32xf32, #tpu.memory_space<vmem>>, vector<1x32xf32>
    %242 = vector.broadcast %241 : vector<1x32xf32> to vector<16x32xf32>
    %243 = arith.addf %240, %242 : vector<16x32xf32>
    %c0_92 = arith.constant 0 : index
    %c0_93 = arith.constant 0 : index
    %244 = vector.load %arg11[%c0_92, %c0_93] : memref<16x32xf32, #tpu.memory_space<vmem>>, vector<16x32xf32>
    tpu.vector_store %arg11[%c0_92, %c0_93], %243 {strides = array<i32>} : memref<16x32xf32, #tpu.memory_space<vmem>>, vector<16x32xf32>,
    return
  }
}

</mosaic_0001>

<bundles_post_ra>
// kernel: encoder_layer_pallas.1
= control target key start
LH: loop header
LB: loop body
LE: loop exit
PB: predicated region body
PF: predicated region fallthrough
CT: control target
= control target key end

     0   :  { %vm41_vm0 = vcmask 261120   ;;  %s3347_s0 = inlined_call_operand.vmem [shape: f32[16,32], index: 0, kind: input, shape index: {}]   ;;  %s3348_s1 = inlined_call_operand.vmem [shape: f32[2,8,8], index: 1, kind: input, shape index: {}]   ;;  %s3349_s2 = inlined_call_operand.vmem [shape: f32[2,8,8], index: 2, kind: input, shape index: {}]   ;;  %s3350_s3 = inlined_call_operand.vmem [shape: f32[32,192], index: 3, kind: input, shape index: {}]   ;;  %s3351_s4 = inlined_call_operand.vmem [shape: f32[1,192], index: 4, kind: input, shape index: {}]   ;;  %s3352_s5 = inlined_call_operand.vmem [shape: f32[64,32], index: 5, kind: input, shape index: {}]   ;;  %s3353_s6 = inlined_call_operand.vmem [shape: f32[1,32], index: 6, kind: input, shape index: {}]   ;;  %s3354_s7 = inlined_call_operand.vmem [shape: f32[32,64], index: 7, kind: input, shape index: {}]   ;;  %s3355_s8 = inlined_call_operand.vmem [shape: f32[1,64], index: 8, kind: input, shape index: {}]   ;;  %s3356_s9 = inlined_call_operand.vmem [shape: f32[64,32], index: 9, kind: input, shape index: {}]   ;;  %s3357_s10 = inlined_call_operand.vmem [shape: f32[1,32], index: 10, kind: input, shape index: {}]   ;;  %s3358_s11 = inlined_call_operand.hbm [shape: f32[16,32], index: 11, kind: output, shape index: {}]  }
   0x1   :  { %v39_v0 = vld [vmem:[%s3347_s0] sm:$0xff]  ;;  %v40_v1 = vld [vmem:[%s3347_s0 + $0x8] sm:$0xff] }
   0x2   :  { %16 = vsyncpa [#allocation3], 0  ;;  %v42_v2 = vsel %vm41_vm0, %v39_v0, 0.0  ;;  %v45_v3 = vsel %vm41_vm0, %v40_v1, 0.0  ;;  %v70_v14 = vld [vmem:[%s3350_s3 + $0x8] sm:$0xff]  ;;  %v72_v15 = vld [vmem:[%s3350_s3 + $0x18] sm:$0xff]  ;;  %v79_v37 = vlaneseq }
   0x3   :  { %43 = vadd.xlane.f32.xlu0 %v42_v2  ;;  %v2522_v16 = vpack.c.bf16 %v72_v15, %v70_v14  ;;  %v69_v17 = vld [vmem:[%s3350_s3] sm:$0xff]  ;;  %v71_v18 = vld [vmem:[%s3350_s3 + $0x10] sm:$0xff]  ;;  %v74_v20 = vld [vmem:[%s3350_s3 + $0x28] sm:$0xff]  ;;  %v2841_v25 = vmov 0.0   ;;  %vm175_vm1 = vcmask 64512   ;;  %s2842_s19 = smov 120  }
   0x4   :  { %v2524_v19 = vpack.c.bf16 %v71_v18, %v69_v17  ;;  %v76_v21 = vld [vmem:[%s3350_s3 + $0x38] sm:$0xff]  ;;  %v73_v22 = vld [vmem:[%s3350_s3 + $0x20] sm:$0xff]  ;;  %v75_v24 = vld [vmem:[%s3350_s3 + $0x30] sm:$0xff]  ;;  %159 = vmatprep.mubr.f32.mxu0 %v2841_v25  ;;  %v80_v38 = vshrl.u32 %v79_v37, 7  ;;  %s2843_s21 = smov 88   ;;  %s2844_s22 = smov 8  }
   0x5   :  { %2523 = vmatprep.subr.bf16.mxu0 %v2522_v16  ;;  %v2526_v23 = vpack.c.bf16 %v76_v21, %v74_v20  ;;  %v2528_v26 = vpack.c.bf16 %v75_v24, %v73_v22  ;;  %v77_v40 = vld [vmem:[%s3351_s4] sm:$0x3]  ;;  %v2212_v55 = vld [vmem:[%s3348_s1 + $0x8] sm:$0xff]  ;;  %vm2986_vm3 = vmpackc.low %vm175_vm1, %vm175_vm1  ;;  %vm279_vm5 = vcmask 130048   ;;  %s2846_s25 = smov 80   ;;  %s2847_s26 = smov 112  }
   0x6   :  { %2525 = vmatpush1.bf16.msra.mxu0 %v2524_v19  ;;  %v81_v39 = vsub.s32 0, %v80_v38  ;;  %v85_v42 = vsub.s32 1, %v80_v38  ;;  %vm179_vm2 = vcmp.eq.f32.partialorder %v2212_v55, 1.0  ;;  %v172_v2 = vld [vmem:[%s3348_s1] sm:$0xff]  ;;  %s2845_s1 = smov 56   ;;  %s2848_s27 = smov 96  }
   0x7   :  { %46 = vadd.xlane.f32.xlu0 %v45_v3  ;;  %2527 = vmatprep.subr.bf16.mxu0 %v2526_v23  ;;  %v180_v58 = vsel %vm179_vm2, -1e+09, %v2841_v25  ;;  %vm173_vm4 = vcmp.eq.f32.partialorder %v172_v2, 1.0  ;;  %s2849_s28 = smov 64   ;;  %s2850_s29 = smov 72   ;;  %vm1017_vm8 = vcmask 195584  }
   0x8   :  { %v82_v41 = vrot.slane %v77_v40, %v81_v39  ;;  %v86_v46 = vrot.slane %v77_v40, %v85_v42  ;;  %s2851_s30 = smov 104   ;;  %s2852_s12 = smov 48   ;;  %vm1879_vm9 = vcmask 523264  }
   0x9   :  { %s2853_s13 = smov 32   ;;  %s2854_s14 = smov 40  }
   0xa   :  { %2529 = vmatpush1.bf16.msra.mxu0 %v2528_v26  ;;  %s2856_s18 = smov 16  }
  0x90   :  { %v44_v4 = vpop.xlane.xlu0 %43 }
  0x91   :  { %v49_v5 = vmul.f32 0.03125, %v44_v4  ;;  %v174_v4 = vsel %vm173_vm4, -1e+09, %v2841_v25 }
  0x93   :  { %v51_v6 = vsub.f32 %v39_v0, %v49_v5 }
  0x94   :  { %v47_v7 = vpop.xlane.xlu0 %46 }
  0x95   :  { %v50_v8 = vmul.f32 0.03125, %v47_v7  ;;  %v53_v9 = vmul.f32 %v51_v6, %v51_v6 }
  0x97   :  { %v52_v10 = vsub.f32 %v40_v1, %v50_v8  ;;  %v55_v11 = vsel %vm41_vm0, %v53_v9, 0.0 }
  0x98   :  { %56 = vadd.xlane.f32.xlu1 %v55_v11 }
  0x99   :  { %v54_v12 = vmul.f32 %v52_v10, %v52_v10 }
  0x9b   :  { %v58_v13 = vsel %vm41_vm0, %v54_v12, 0.0 }
  0x9c   :  { %59 = vadd.xlane.f32.xlu1 %v58_v13 }
 0x125   :  { %v57_v27 = vpop.xlane.xlu1 %56 }
 0x126   :  { %v61_v28 = vmul.f32 0.03125, %v57_v27 }
 0x128   :  { %v63_v29 = vadd.f32 1e-05, %v61_v28 }
 0x129   :  { %v60_v30 = vpop.xlane.xlu1 %59 }
 0x12a   :  { %2743 = vrsqrt.f32 %v63_v29  ;;  %v62_v31 = vmul.f32 0.03125, %v60_v30 }
 0x12c   :  { %v64_v32 = vadd.f32 1e-05, %v62_v31 }
 0x12e   :  { %2745 = vrsqrt.f32 %v64_v32 }
 0x134   :  { %v2744_v33 = vpop.eup %2743 }
 0x135   :  { %v67_v34 = vmul.f32 %v2744_v33, %v51_v6  ;;  %v3003_v6 = vsel %vm175_vm1, %v174_v4, -1e+30 }
 0x137   :  { %2210 = vmatmul.mubr.msk.f32.vlgmr.msra.gmra.mrb[0].mxu0 %vm41_vm0, %v67_v34 }
 0x138   :  { %v2746_v35 = vpop.eup %2745  ;;  %165 = vmatprep.mubr.f32.mxu0 %v2841_v25 }
 0x139   :  { %v68_v36 = vmul.f32 %v2746_v35, %v52_v10 }
 0x13b   :  { %2211 = vmatmul.mubr.msk.f32.gmra.mrb[2].mxu0 %vm41_vm0, %v68_v36 }
 0x20a   :  { %v161_v43 = vpop.f32.mrb[0].mxu0 }
 0x20b   :  { %v162_v44 = vadd.f32 %v161_v43, %v82_v41  ;;  %v163_v45 = vpop.f32.mrb[1].mxu0 }
 0x20c   :  { %v164_v51 = vadd.f32 %v163_v45, %v86_v46 }
 0x20d   :  { %v2960_v47 = vmul.f32 0.35355338, %v162_v44 }
 0x20e   :  { %v167_v48 = vpop.f32.mrb[2].mxu0 }
 0x20f   :  { %v168_v49 = vadd.f32 %v167_v48, %v82_v41  ;;  %2365 = vmatprep.mubr.msk.f32.mxu1 %vm175_vm1, %v2960_v47  ;;  %389 = vrot.lane.b32.xlu1 %v2960_v47, %s2842_s19  ;;  %v169_v50 = vpop.f32.mrb[3].mxu0 }
 0x210   :  { %v170_v52 = vadd.f32 %v169_v50, %v86_v46 }
 0x211   :  { %v2966_v53 = vpack.i.bf16 %v168_v49, %v162_v44  ;;  %v2968_v54 = vmul.f32 0.35355338, %v168_v49 }
 0x212   :  { %v2977_v56 = vpack.c.bf16 %v170_v52, %v164_v51  ;;  %v2979_v57 = vpack.i.bf16 %v170_v52, %v164_v51 }
 0x213   :  { %2669 = vrot.lane.b32.xlu0 %v2966_v53, %s2843_s21  ;;  %391 = vrot.lane.b32.xlu1 %v2968_v54, %s2842_s19 }
 0x217   :  { %182 = vrot.lane.b32.xlu1 %v180_v58, %s2844_s22 }
 0x281   :  { %v390_v59 = vpop.permute.xlu1 %389 }
 0x282   :  { %2379 = vmatprep.mubr.msk.f32.mxu0 %vm175_vm1, %v390_v59 }
 0x285   :  { %v2670_v60 = vpop.permute.xlu0 %2669  ;;  %v392_v1 = vpop.permute.xlu1 %391 }
 0x286   :  { %v2672_v61 = vunpack.i.h.bf16 %v2670_v60  ;;  %v2671_v62 = vunpack.i.l.bf16 %v2670_v60 }
 0x288   :  { %v2540_v0 = vpack.c.bf16 %v2672_v61, %v2671_v62 }
 0x289   :  { %v183_v3 = vpop.permute.xlu1 %182 }
 0x28a   :  { %2542 = vmatprep.subr.msk.bf16.mxu0 %vm2986_vm3, %v2540_v0  ;;  %v3000_v5 = vsel %vm175_vm1, -1e+30, %v183_v3 }
 0x28b   :  { %2545 = vmatpush3.bf16.xpose.msk.msra.mxu0 %vm2986_vm3, %v2540_v0 }
 0x292   :  { %2380 = vmatmul.mubr.msk.f32.vlgmr.msra.gmra.mrb[4].mxu0 %vm175_vm1, %v392_v1 }
 0x365   :  { %v2381_v7 = vpop.f32.mrb[4].mxu0 }
 0x366   :  { %v477_v8 = vadd.f32 %v2381_v7, %v3000_v5  ;;  %v471_v9 = vpop.f32.mrb[5].mxu0 }
 0x367   :  { %v472_v10 = vadd.f32 %v471_v9, %v3003_v6 }
 0x368   :  { %v483_v11 = vsel %vm279_vm5, %v477_v8, -inf }
 0x369   :  { %484 = vmax.xlane.f32.xlu1 %v483_v11  ;;  %v480_v12 = vsel %vm279_vm5, %v472_v10, -inf }
 0x36a   :  { %481 = vmax.xlane.f32.xlu0 %v480_v12 }
 0x37a   :  { %2679 = vrot.lane.b32.xlu1 %v2966_v53, %s2845_s1 }
 0x37e   :  { %2684 = vrot.lane.b32.xlu1 %v2966_v53, %s2846_s25 }
 0x382   :  { %589 = vrot.lane.b32.xlu1 %v2960_v47, %s2847_s26 }
 0x3f6   :  { %v485_v13 = vpop.xlane.xlu1 %484 }
 0x3f7   :  { %v487_v14 = vsub.f32 %v477_v8, %v485_v13  ;;  %v482_v15 = vpop.xlane.xlu0 %481 }
 0x3f8   :  { %v486_v16 = vsub.f32 %v472_v10, %v482_v15 }
 0x3f9   :  { %v490_v17 = vmul.f32 1.442695, %v487_v14 }
 0x3fa   :  { %v488_v18 = vmul.f32 1.442695, %v486_v16  ;;  %v2680_v19 = vpop.permute.xlu1 %2679 }
 0x3fb   :  { %2747 = vpow2.f32 %v490_v17  ;;  %v2682_v20 = vunpack.i.h.bf16 %v2680_v19  ;;  %v2681_v21 = vunpack.i.l.bf16 %v2680_v19 }
 0x3fc   :  { %2749 = vpow2.f32 %v488_v18 }
 0x3fd   :  { %v2546_v22 = vpack.c.bf16 %v2682_v20, %v2681_v21 }
 0x3fe   :  { %v2685_v23 = vpop.permute.xlu1 %2684 }
 0x3ff   :  { %v2687_v24 = vunpack.i.h.bf16 %v2685_v23  ;;  %v2686_v26 = vunpack.i.l.bf16 %v2685_v23  ;;  %2547 = vmatprep.subr.bf16.mxu0 %v2546_v22 }
 0x400   :  { %2549 = vmatpush3.bf16.msra.mxu0 %v2546_v22 }
 0x401   :  { %v2550_v27 = vpack.c.bf16 %v2687_v24, %v2686_v26 }
 0x402   :  { %v590_v42 = vpop.permute.xlu1 %589 }
 0x403   :  { %2552 = vmatprep.subr.msk.bf16.mxu0 %vm2986_vm3, %v2550_v27 }
 0x405   :  { %v2748_v28 = vpop.eup %2747 }
 0x406   :  { %v495_v29 = vsel %vm279_vm5, %v2748_v28, 0.0  ;;  %v2750_v30 = vpop.eup %2749 }
 0x407   :  { %496 = vadd.xlane.f32.xlu0 %v495_v29  ;;  %v492_v31 = vsel %vm279_vm5, %v2750_v30, 0.0 }
 0x40b   :  { %493 = vadd.xlane.f32.xlu0 %v492_v31 }
 0x421   :  { %2674 = vrot.lane.b32.xlu0 %v2966_v53, %s2848_s27 }
 0x425   :  { %591 = vrot.lane.b32.xlu0 %v2968_v54, %s2847_s26 }
 0x494   :  { %v497_v32 = vpop.xlane.xlu0 %496 }
 0x495   :  { %2751 = vrcp.f32 %v497_v32 }
 0x498   :  { %v494_v33 = vpop.xlane.xlu0 %493 }
 0x499   :  { %2753 = vrcp.f32 %v494_v33 }
 0x49c   :  { %v2675_v34 = vpop.permute.xlu0 %2674 }
 0x49d   :  { %v2677_v35 = vunpack.i.h.bf16 %v2675_v34  ;;  %v2676_v36 = vunpack.i.l.bf16 %v2675_v34 }
 0x49f   :  { %v2530_v37 = vpack.c.bf16 %v2677_v35, %v2676_v36  ;;  %v2752_v38 = vpop.eup %2751 }
 0x4a0   :  { %v501_v41 = vmul.f32 %v2752_v38, %v2748_v28  ;;  %v592_v43 = vpop.permute.xlu0 %591 }
 0x4a1   :  { %2532 = vmatprep.subr.msk.bf16.mxu1 %vm2986_vm3, %v2530_v37 }
 0x4a2   :  { %2535 = vmatpush3.bf16.xpose.msk.msra.mxu1 %vm2986_vm3, %v2530_v37 }
 0x4a3   :  { %v2754_v39 = vpop.eup %2753 }
 0x4a4   :  { %v500_v40 = vmul.f32 %v2754_v39, %v2750_v30 }
 0x4a6   :  { %2386 = vmatprep.mubr.msk.f32.mxu0 %vm279_vm5, %v500_v40 }
 0x4a7   :  { %2387 = vmatmul.mubr.msk.f32.vlgmr.msra.gmra.mrb[6].mxu0 %vm279_vm5, %v501_v41 }
 0x4a8   :  { %2555 = vmatpush3.bf16.xpose.msk.msra.mxu0 %vm2986_vm3, %v2550_v27  ;;  %2393 = vmatprep.mubr.msk.f32.mxu0 %vm175_vm1, %v590_v42 }
 0x4a9   :  { %2366 = vmatmul.mubr.msk.f32.vlgmr.msra.gmra.mrb[0].mxu1 %vm175_vm1, %v2968_v54 }
 0x4af   :  { %2394 = vmatmul.mubr.msk.f32.vlgmr.msra.gmra.mrb[8].mxu0 %vm175_vm1, %v592_v43 }
 0x57a   :  { %v3034_v44 = vpop.f32.mrb[6].mxu0 }
 0x57b   :  { %v3036_v45 = vpop.f32.mrb[7].mxu0 }
 0x57c   :  { %v2367_v46 = vpop.f32.mrb[0].mxu1 }
 0x57d   :  { %v276_v48 = vadd.f32 %v2367_v46, %v3000_v5  ;;  %v270_v49 = vpop.f32.mrb[1].mxu1 }
 0x57e   :  { %v271_v50 = vadd.f32 %v270_v49, %v3003_v6 }
 0x57f   :  { %v283_v51 = vsel %vm279_vm5, %v276_v48, -inf }
 0x580   :  { %284 = vmax.xlane.f32.xlu0 %v283_v51  ;;  %v280_v52 = vsel %vm279_vm5, %v271_v50, -inf }
 0x581   :  { %281 = vmax.xlane.f32.xlu1 %v280_v52 }
 0x582   :  { %v2395_v55 = vpop.f32.mrb[8].mxu0 }
 0x583   :  { %v671_v58 = vpop.f32.mrb[9].mxu0  ;;  %v677_v60 = vadd.f32 %v2395_v55, %v3000_v5 }
 0x584   :  { %v672_v59 = vadd.f32 %v671_v58, %v3003_v6 }
 0x585   :  { %v683_v62 = vsel %vm279_vm5, %v677_v60, -inf }
 0x586   :  { %v680_v61 = vsel %vm279_vm5, %v672_v59, -inf }
 0x587   :  { %681 = vmax.xlane.f32.xlu0 %v680_v61 }
 0x58b   :  { %684 = vmax.xlane.f32.xlu0 %v683_v62 }
 0x60d   :  { %v285_v0 = vpop.xlane.xlu0 %284 }
 0x60e   :  { %v287_v1 = vsub.f32 %v276_v48, %v285_v0  ;;  %v282_v2 = vpop.xlane.xlu1 %281 }
 0x60f   :  { %v286_v3 = vsub.f32 %v271_v50, %v282_v2 }
 0x610   :  { %v290_v4 = vmul.f32 1.442695, %v287_v1 }
 0x611   :  { %v288_v7 = vmul.f32 1.442695, %v286_v3 }
 0x612   :  { %2755 = vpow2.f32 %v290_v4 }
 0x613   :  { %2757 = vpow2.f32 %v288_v7 }
 0x614   :  { %v682_v8 = vpop.xlane.xlu0 %681 }
 0x615   :  { %v686_v18 = vsub.f32 %v672_v59, %v682_v8 }
 0x617   :  { %v688_v19 = vmul.f32 1.442695, %v686_v18 }
 0x618   :  { %v685_v9 = vpop.xlane.xlu0 %684 }
 0x619   :  { %v687_v10 = vsub.f32 %v677_v60, %v685_v9 }
 0x61b   :  { %v690_v11 = vmul.f32 1.442695, %v687_v10 }
 0x61c   :  { %v2756_v12 = vpop.eup %2755 }
 0x61d   :  { %v2758_v13 = vpop.eup %2757  ;;  %2759 = vpow2.f32 %v690_v11  ;;  %v295_v14 = vsel %vm279_vm5, %v2756_v12, 0.0 }
 0x61e   :  { %296 = vadd.xlane.f32.xlu0 %v295_v14  ;;  %v292_v15 = vsel %vm279_vm5, %v2758_v13, 0.0  ;;  %2761 = vpow2.f32 %v688_v19 }
 0x61f   :  { %293 = vadd.xlane.f32.xlu1 %v292_v15 }
 0x627   :  { %v2760_v16 = vpop.eup %2759 }
 0x628   :  { %v695_v17 = vsel %vm279_vm5, %v2760_v16, 0.0  ;;  %v2762_v20 = vpop.eup %2761 }
 0x629   :  { %696 = vadd.xlane.f32.xlu0 %v695_v17  ;;  %v692_v21 = vsel %vm279_vm5, %v2762_v20, 0.0 }
 0x630   :  { %2689 = vrot.lane.b32.xlu1 %v2966_v53, %s2849_s28 }
 0x634   :  { %2699 = vrot.lane.b32.xlu1 %v2966_v53, %s2850_s29 }
 0x638   :  { %789 = vrot.lane.b32.xlu1 %v2960_v47, %s2851_s30 }
 0x63f   :  { %2694 = vrot.lane.b32.xlu0 %v2966_v53, %s2852_s12 }
 0x65c   :  { %693 = vadd.xlane.f32.xlu1 %v692_v21 }
 0x66d   :  { %791 = vrot.lane.b32.xlu1 %v2968_v54, %s2851_s30 }
 0x6ab   :  { %v297_v22 = vpop.xlane.xlu0 %296 }
 0x6ac   :  { %2763 = vrcp.f32 %v297_v22  ;;  %v294_v23 = vpop.xlane.xlu1 %293 }
 0x6ad   :  { %2765 = vrcp.f32 %v294_v23 }
 0x6b0   :  { %v2690_v24 = vpop.permute.xlu1 %2689 }
 0x6b1   :  { %v2692_v26 = vunpack.i.h.bf16 %v2690_v24  ;;  %v2691_v27 = vunpack.i.l.bf16 %v2690_v24 }
 0x6b3   :  { %v2536_v28 = vpack.c.bf16 %v2692_v26, %v2691_v27 }
 0x6b4   :  { %v2700_v32 = vpop.permute.xlu1 %2699 }
 0x6b5   :  { %2537 = vmatprep.subr.bf16.mxu1 %v2536_v28  ;;  %v2702_v36 = vunpack.i.h.bf16 %v2700_v32  ;;  %v2701_v37 = vunpack.i.l.bf16 %v2700_v32 }
 0x6b6   :  { %v2764_v29 = vpop.eup %2763  ;;  %v697_v30 = vpop.xlane.xlu0 %696  ;;  %2539 = vmatpush3.bf16.msra.mxu1 %v2536_v28 }
 0x6b7   :  { %v2766_v31 = vpop.eup %2765  ;;  %v301_v34 = vmul.f32 %v2764_v29, %v2756_v12  ;;  %v2560_v41 = vpack.c.bf16 %v2702_v36, %v2701_v37  ;;  %2767 = vrcp.f32 %v697_v30  ;;  %v1020_v29 = vld [vmem:[%s3349_s2] sm:$0xff] }
 0x6b8   :  { %v300_v33 = vmul.f32 %v2766_v31, %v2758_v13  ;;  %v790_v42 = vpop.permute.xlu1 %789  ;;  %v2237_v13 = vld [vmem:[%s3349_s2 + $0x8] sm:$0xff]  ;;  %vm1021_vm7 = vcmp.eq.f32.partialorder %v1020_v29, 1.0  ;;  %s2855_s2 = smov 24  }
 0x6b9   :  { %vm1026_vm6 = vcmp.eq.f32.partialorder %v2237_v13, 1.0  ;;  %v1022_v31 = vsel %vm1021_vm7, -1e+09, %v2841_v25 }
 0x6ba   :  { %v2695_v35 = vpop.permute.xlu0 %2694  ;;  %2372 = vmatprep.mubr.msk.f32.mxu1 %vm279_vm5, %v300_v33  ;;  %v1027_v14 = vsel %vm1026_vm6, -1e+09, %v2841_v25 }
 0x6bb   :  { %v2697_v38 = vunpack.i.h.bf16 %v2695_v35  ;;  %v2696_v39 = vunpack.i.l.bf16 %v2695_v35  ;;  %2373 = vmatmul.mubr.msk.f32.vlgmr.msra.gmra.mrb[2].mxu1 %vm279_vm5, %v301_v34 }
 0x6bd   :  { %v2556_v40 = vpack.c.bf16 %v2697_v38, %v2696_v39 }
 0x6bf   :  { %2557 = vmatprep.subr.bf16.mxu1 %v2556_v40 }
 0x6c0   :  { %2559 = vmatpush3.bf16.msra.mxu1 %v2556_v40 }
 0x6c1   :  { %2562 = vmatprep.subr.msk.bf16.mxu1 %vm2986_vm3, %v2560_v41  ;;  %v2768_v46 = vpop.eup %2767 }
 0x6c2   :  { %v701_v50 = vmul.f32 %v2768_v46, %v2760_v16 }
 0x6e9   :  { %v694_v43 = vpop.xlane.xlu1 %693 }
 0x6ea   :  { %2769 = vrcp.f32 %v694_v43 }
 0x6ed   :  { %v792_v51 = vpop.permute.xlu1 %791 }
 0x6f4   :  { %v2770_v48 = vpop.eup %2769 }
 0x6f5   :  { %v700_v49 = vmul.f32 %v2770_v48, %v2762_v20 }
 0x6f7   :  { %2400 = vmatprep.mubr.msk.f32.mxu1 %vm279_vm5, %v700_v49 }
 0x6f8   :  { %2401 = vmatmul.mubr.msk.f32.vlgmr.msra.gmra.mrb[4].mxu1 %vm279_vm5, %v701_v50 }
 0x6f9   :  { %2565 = vmatpush3.bf16.xpose.msk.msra.mxu1 %vm2986_vm3, %v2560_v41  ;;  %2407 = vmatprep.mubr.msk.f32.mxu1 %vm175_vm1, %v790_v42 }
 0x700   :  { %2408 = vmatmul.mubr.msk.f32.vlgmr.msra.gmra.mrb[6].mxu1 %vm175_vm1, %v792_v51 }
 0x78e   :  { %v3068_v52 = vpop.f32.mrb[2].mxu1 }
 0x78f   :  { %v3070_v55 = vpop.f32.mrb[3].mxu1 }
 0x7cb   :  { %v3072_v58 = vpop.f32.mrb[4].mxu1 }
 0x7cc   :  { %v3074_v59 = vpop.f32.mrb[5].mxu1 }
 0x7d3   :  { %v2409_v60 = vpop.f32.mrb[6].mxu1 }
 0x7d4   :  { %v877_v61 = vadd.f32 %v2409_v60, %v3000_v5  ;;  %v871_v62 = vpop.f32.mrb[7].mxu1 }
 0x7d5   :  { %v872_v0 = vadd.f32 %v871_v62, %v3003_v6 }
 0x7d6   :  { %v883_v1 = vsel %vm279_vm5, %v877_v61, -inf }
 0x7d7   :  { %884 = vmax.xlane.f32.xlu1 %v883_v1  ;;  %v880_v2 = vsel %vm279_vm5, %v872_v0, -inf }
 0x7d8   :  { %881 = vmax.xlane.f32.xlu0 %v880_v2 }
 0x7e8   :  { %1033 = vrot.lane.b32.xlu1 %v2960_v47, %s2853_s13 }
 0x7ec   :  { %1035 = vrot.lane.b32.xlu1 %v2968_v54, %s2853_s13 }
 0x7f0   :  { %1029 = vrot.lane.b32.xlu1 %v1027_v14, %s2844_s22 }
 0x864   :  { %v885_v3 = vpop.xlane.xlu1 %884 }
 0x865   :  { %v887_v4 = vsub.f32 %v877_v61, %v885_v3  ;;  %v882_v7 = vpop.xlane.xlu0 %881 }
 0x866   :  { %v886_v5 = vsub.f32 %v872_v0, %v882_v7 }
 0x867   :  { %v890_v8 = vmul.f32 1.442695, %v887_v4 }
 0x868   :  { %v888_v9 = vmul.f32 1.442695, %v886_v5  ;;  %v1034_v24 = vpop.permute.xlu1 %1033 }
 0x869   :  { %2771 = vpow2.f32 %v890_v8 }
 0x86a   :  { %2773 = vpow2.f32 %v888_v9 }
 0x86c   :  { %v1036_v26 = vpop.permute.xlu1 %1035 }
 0x870   :  { %v1030_v30 = vpop.permute.xlu1 %1029 }
 0x871   :  { %v3111_v32 = vsel %vm175_vm1, -1e+30, %v1030_v30 }
 0x873   :  { %v2772_v6 = vpop.eup %2771 }
 0x874   :  { %v895_v10 = vsel %vm279_vm5, %v2772_v6, 0.0  ;;  %v2774_v11 = vpop.eup %2773 }
 0x875   :  { %896 = vadd.xlane.f32.xlu0 %v895_v10  ;;  %v892_v12 = vsel %vm279_vm5, %v2774_v11, 0.0 }
 0x879   :  { %893 = vadd.xlane.f32.xlu0 %v892_v12 }
 0x88f   :  { %2704 = vrot.lane.b32.xlu0 %v2966_v53, %s2854_s14 }
 0x902   :  { %v897_v15 = vpop.xlane.xlu0 %896 }
 0x903   :  { %2775 = vrcp.f32 %v897_v15 }
 0x906   :  { %v894_v16 = vpop.xlane.xlu0 %893 }
 0x907   :  { %2777 = vrcp.f32 %v894_v16 }
 0x90a   :  { %v2705_v17 = vpop.permute.xlu0 %2704 }
 0x90b   :  { %v2707_v18 = vunpack.i.h.bf16 %v2705_v17  ;;  %v2706_v19 = vunpack.i.l.bf16 %v2705_v17 }
 0x90d   :  { %v2566_v20 = vpack.c.bf16 %v2707_v18, %v2706_v19  ;;  %v2776_v21 = vpop.eup %2775 }
 0x90e   :  { %v901_v23 = vmul.f32 %v2776_v21, %v2772_v6 }
 0x90f   :  { %2567 = vmatprep.subr.bf16.mxu0 %v2566_v20 }
 0x910   :  { %2569 = vmatpush3.bf16.msra.mxu0 %v2566_v20 }
 0x911   :  { %v2778_v53 = vpop.eup %2777  ;;  %2572 = vmatprep.subr.msk.bf16.mxu0 %vm2986_vm3, %v2977_v56 }
 0x912   :  { %v900_v22 = vmul.f32 %v2778_v53, %v2774_v11 }
 0x914   :  { %2414 = vmatprep.mubr.msk.f32.mxu0 %vm279_vm5, %v900_v22 }
 0x915   :  { %2415 = vmatmul.mubr.msk.f32.vlgmr.msra.gmra.mrb[10].mxu0 %vm279_vm5, %v901_v23 }
 0x916   :  { %2421 = vmatprep.mubr.msk.f32.mxu0 %vm175_vm1, %v1034_v24 }
 0x919   :  { %2575 = vmatpush3.bf16.xpose.msk.msra.mxu0 %vm2986_vm3, %v2977_v56  ;;  %v3114_v56 = vsel %vm175_vm1, %v1022_v31, -1e+30 }
 0x920   :  { %2422 = vmatmul.mubr.msk.f32.vlgmr.msra.gmra.mrb[12].mxu0 %vm175_vm1, %v1036_v26 }
 0x9e8   :  { %v3102_v27 = vpop.f32.mrb[10].mxu0 }
 0x9e9   :  { %v3104_v28 = vpop.f32.mrb[11].mxu0 }
 0x9f3   :  { %v2423_v33 = vpop.f32.mrb[12].mxu0 }
 0x9f4   :  { %v1119_v34 = vadd.f32 %v2423_v33, %v3111_v32  ;;  %v1113_v35 = vpop.f32.mrb[13].mxu0 }
 0x9f5   :  { %v1114_v36 = vadd.f32 %v1113_v35, %v3114_v56 }
 0x9f6   :  { %v1125_v37 = vsel %vm279_vm5, %v1119_v34, -inf }
 0x9f7   :  { %1126 = vmax.xlane.f32.xlu1 %v1125_v37  ;;  %v1122_v38 = vsel %vm279_vm5, %v1114_v36, -inf }
 0x9f8   :  { %1123 = vmax.xlane.f32.xlu0 %v1122_v38 }
 0xa08   :  { %2714 = vrot.lane.b32.xlu1 %v2979_v57, %s2842_s19 }
 0xa0c   :  { %1231 = vrot.lane.b32.xlu1 %v2960_v47, %s2855_s2 }
 0xa10   :  { %1233 = vrot.lane.b32.xlu1 %v2968_v54, %s2855_s2 }
 0xa84   :  { %v1127_v25 = vpop.xlane.xlu1 %1126 }
 0xa85   :  { %v1129_v39 = vsub.f32 %v1119_v34, %v1127_v25  ;;  %v1124_v40 = vpop.xlane.xlu0 %1123 }
 0xa86   :  { %v1128_v41 = vsub.f32 %v1114_v36, %v1124_v40 }
 0xa87   :  { %v1132_v42 = vmul.f32 1.442695, %v1129_v39 }
 0xa88   :  { %v1130_v43 = vmul.f32 1.442695, %v1128_v41  ;;  %v2715_v61 = vpop.permute.xlu1 %2714 }
 0xa89   :  { %2779 = vpow2.f32 %v1132_v42  ;;  %v2717_v0 = vunpack.i.h.bf16 %v2715_v61  ;;  %v2716_v1 = vunpack.i.l.bf16 %v2715_v61 }
 0xa8a   :  { %2781 = vpow2.f32 %v1130_v43 }
 0xa8b   :  { %v2580_v7 = vpack.c.bf16 %v2717_v0, %v2716_v1 }
 0xa8c   :  { %v1232_v10 = vpop.permute.xlu1 %1231 }
 0xa90   :  { %v1234_v11 = vpop.permute.xlu1 %1233 }
 0xa93   :  { %v2780_v46 = vpop.eup %2779 }
 0xa94   :  { %v1137_v48 = vsel %vm279_vm5, %v2780_v46, 0.0  ;;  %v2782_v49 = vpop.eup %2781 }
 0xa95   :  { %1138 = vadd.xlane.f32.xlu0 %v1137_v48  ;;  %v1134_v50 = vsel %vm279_vm5, %v2782_v49, 0.0 }
 0xa99   :  { %1135 = vadd.xlane.f32.xlu0 %v1134_v50 }
 0xaaf   :  { %2709 = vrot.lane.b32.xlu0 %v2979_v57, %s2848_s27 }
 0xb22   :  { %v1139_v51 = vpop.xlane.xlu0 %1138 }
 0xb23   :  { %2783 = vrcp.f32 %v1139_v51 }
 0xb26   :  { %v1136_v60 = vpop.xlane.xlu0 %1135 }
 0xb27   :  { %2785 = vrcp.f32 %v1136_v60 }
 0xb2a   :  { %v2710_v62 = vpop.permute.xlu0 %2709 }
 0xb2b   :  { %v2712_v2 = vunpack.i.h.bf16 %v2710_v62  ;;  %v2711_v3 = vunpack.i.l.bf16 %v2710_v62 }
 0xb2d   :  { %v2576_v4 = vpack.c.bf16 %v2712_v2, %v2711_v3  ;;  %v2784_v5 = vpop.eup %2783 }
 0xb2e   :  { %v1143_v6 = vmul.f32 %v2784_v5, %v2780_v46 }
 0xb2f   :  { %2577 = vmatprep.subr.bf16.mxu1 %v2576_v4 }
 0xb30   :  { %2579 = vmatpush3.bf16.msra.mxu1 %v2576_v4 }
 0xb31   :  { %v2786_v8 = vpop.eup %2785  ;;  %2582 = vmatprep.subr.msk.bf16.mxu1 %vm2986_vm3, %v2580_v7 }
 0xb32   :  { %v1142_v9 = vmul.f32 %v2786_v8, %v2782_v49 }
 0xb34   :  { %2428 = vmatprep.mubr.msk.f32.mxu1 %vm279_vm5, %v1142_v9 }
 0xb35   :  { %2429 = vmatmul.mubr.msk.f32.vlgmr.msra.gmra.mrb[8].mxu1 %vm279_vm5, %v1143_v6 }
 0xb36   :  { %2435 = vmatprep.mubr.msk.f32.mxu1 %vm175_vm1, %v1232_v10 }
 0xb39   :  { %2585 = vmatpush3.bf16.xpose.msk.msra.mxu1 %vm2986_vm3, %v2580_v7 }
 0xb40   :  { %2436 = vmatmul.mubr.msk.f32.vlgmr.msra.gmra.mrb[10].mxu1 %vm175_vm1, %v1234_v11 }
 0xc08   :  { %v3138_v12 = vpop.f32.mrb[8].mxu1 }
 0xc09   :  { %v3140_v13 = vpop.f32.mrb[9].mxu1 }
 0xc13   :  { %v2437_v14 = vpop.f32.mrb[10].mxu1 }
 0xc14   :  { %v1319_v15 = vadd.f32 %v2437_v14, %v3111_v32  ;;  %v1313_v16 = vpop.f32.mrb[11].mxu1 }
 0xc15   :  { %v1314_v17 = vadd.f32 %v1313_v16, %v3114_v56 }
 0xc16   :  { %v1325_v18 = vsel %vm279_vm5, %v1319_v15, -inf }
 0xc17   :  { %1326 = vmax.xlane.f32.xlu1 %v1325_v18  ;;  %v1322_v19 = vsel %vm279_vm5, %v1314_v17, -inf }
 0xc18   :  { %1323 = vmax.xlane.f32.xlu0 %v1322_v19 }
 0xc28   :  { %2724 = vrot.lane.b32.xlu1 %v2979_v57, %s2847_s26 }
 0xc2c   :  { %1431 = vrot.lane.b32.xlu1 %v2960_v47, %s2856_s18 }
 0xc30   :  { %1433 = vrot.lane.b32.xlu1 %v2968_v54, %s2856_s18 }
 0xca4   :  { %v1327_v20 = vpop.xlane.xlu1 %1326 }
 0xca5   :  { %v1329_v21 = vsub.f32 %v1319_v15, %v1327_v20  ;;  %v1324_v53 = vpop.xlane.xlu0 %1323 }
 0xca6   :  { %v1328_v22 = vsub.f32 %v1314_v17, %v1324_v53 }
 0xca7   :  { %v1332_v23 = vmul.f32 1.442695, %v1329_v21 }
 0xca8   :  { %v1330_v24 = vmul.f32 1.442695, %v1328_v22  ;;  %v2725_v35 = vpop.permute.xlu1 %2724 }
 0xca9   :  { %2787 = vpow2.f32 %v1332_v23  ;;  %v2727_v37 = vunpack.i.h.bf16 %v2725_v35  ;;  %v2726_v38 = vunpack.i.l.bf16 %v2725_v35 }
 0xcaa   :  { %2789 = vpow2.f32 %v1330_v24 }
 0xcab   :  { %v2590_v41 = vpack.c.bf16 %v2727_v37, %v2726_v38 }
 0xcac   :  { %v1432_v49 = vpop.permute.xlu1 %1431 }
 0xcb0   :  { %v1434_v50 = vpop.permute.xlu1 %1433 }
 0xcb3   :  { %v2788_v26 = vpop.eup %2787 }
 0xcb4   :  { %v1337_v29 = vsel %vm279_vm5, %v2788_v26, 0.0  ;;  %v2790_v30 = vpop.eup %2789 }
 0xcb5   :  { %1338 = vadd.xlane.f32.xlu0 %v1337_v29  ;;  %v1334_v31 = vsel %vm279_vm5, %v2790_v30, 0.0 }
 0xcb9   :  { %1335 = vadd.xlane.f32.xlu0 %v1334_v31 }
 0xccf   :  { %2719 = vrot.lane.b32.xlu0 %v2979_v57, %s2843_s21 }
 0xd42   :  { %v1339_v33 = vpop.xlane.xlu0 %1338 }
 0xd43   :  { %2791 = vrcp.f32 %v1339_v33 }
 0xd46   :  { %v1336_v34 = vpop.xlane.xlu0 %1335 }
 0xd47   :  { %2793 = vrcp.f32 %v1336_v34 }
 0xd4a   :  { %v2720_v36 = vpop.permute.xlu0 %2719 }
 0xd4b   :  { %v2722_v25 = vunpack.i.h.bf16 %v2720_v36  ;;  %v2721_v39 = vunpack.i.l.bf16 %v2720_v36 }
 0xd4d   :  { %v2586_v40 = vpack.c.bf16 %v2722_v25, %v2721_v39  ;;  %v2792_v42 = vpop.eup %2791 }
 0xd4e   :  { %v1343_v48 = vmul.f32 %v2792_v42, %v2788_v26 }
 0xd4f   :  { %2587 = vmatprep.subr.bf16.mxu0 %v2586_v40 }
 0xd50   :  { %2589 = vmatpush3.bf16.msra.mxu0 %v2586_v40 }
 0xd51   :  { %v2794_v43 = vpop.eup %2793  ;;  %2592 = vmatprep.subr.msk.bf16.mxu0 %vm2986_vm3, %v2590_v41 }
 0xd52   :  { %v1342_v46 = vmul.f32 %v2794_v43, %v2790_v30 }
 0xd54   :  { %2442 = vmatprep.mubr.msk.f32.mxu0 %vm279_vm5, %v1342_v46 }
 0xd55   :  { %2443 = vmatmul.mubr.msk.f32.vlgmr.msra.gmra.mrb[14].mxu0 %vm279_vm5, %v1343_v48 }
 0xd56   :  { %2449 = vmatprep.mubr.msk.f32.mxu0 %vm175_vm1, %v1432_v49 }
 0xd59   :  { %2595 = vmatpush3.bf16.xpose.msk.msra.mxu0 %vm2986_vm3, %v2590_v41 }
 0xd60   :  { %2450 = vmatmul.mubr.msk.f32.vlgmr.msra.gmra.mrb[16].mxu0 %vm175_vm1, %v1434_v50 }
 0xe28   :  { %v3164_v51 = vpop.f32.mrb[14].mxu0 }
 0xe29   :  { %v1422_v60 = vpop.f32.mrb[15].mxu0 }
 0xe33   :  { %v2451_v61 = vpop.f32.mrb[16].mxu0 }
 0xe34   :  { %v1519_v62 = vadd.f32 %v2451_v61, %v3111_v32  ;;  %v1513_v0 = vpop.f32.mrb[17].mxu0 }
 0xe35   :  { %v1514_v1 = vadd.f32 %v1513_v0, %v3114_v56 }
 0xe36   :  { %v1525_v2 = vsel %vm279_vm5, %v1519_v62, -inf }
 0xe37   :  { %1526 = vmax.xlane.f32.xlu1 %v1525_v2  ;;  %v1522_v3 = vsel %vm279_vm5, %v1514_v1, -inf }
 0xe38   :  { %1523 = vmax.xlane.f32.xlu0 %v1522_v3 }
 0xe48   :  { %2734 = vrot.lane.b32.xlu1 %v2979_v57, %s2851_s30 }
 0xe4c   :  { %1631 = vrot.lane.b32.xlu1 %v2960_v47, %s2844_s22 }
 0xe50   :  { %1633 = vrot.lane.b32.xlu1 %v2968_v54, %s2844_s22 }
 0xec4   :  { %v1527_v4 = vpop.xlane.xlu1 %1526 }
 0xec5   :  { %v1529_v7 = vsub.f32 %v1519_v62, %v1527_v4  ;;  %v1524_v5 = vpop.xlane.xlu0 %1523 }
 0xec6   :  { %v1528_v8 = vsub.f32 %v1514_v1, %v1524_v5  ;;  %v1871_v5 = vld [vmem:[%s3352_s5] sm:$0xff] }
 0xec7   :  { %v1532_v9 = vmul.f32 1.442695, %v1529_v7 }
 0xec8   :  { %v1530_v6 = vmul.f32 1.442695, %v1528_v8  ;;  %v2735_v16 = vpop.permute.xlu1 %2734  ;;  %v1872_v8 = vld [vmem:[%s3352_s5 + $0x8] sm:$0xff] }
 0xec9   :  { %2795 = vpow2.f32 %v1532_v9  ;;  %v2737_v18 = vunpack.i.h.bf16 %v2735_v16  ;;  %v2736_v19 = vunpack.i.l.bf16 %v2735_v16  ;;  %v1873_v9 = vld [vmem:[%s3352_s5 + $0x10] sm:$0xff]  ;;  %v1878_v16 = vld [vmem:[%s3352_s5 + $0x38] sm:$0xff] }
 0xeca   :  { %2797 = vpow2.f32 %v1530_v6  ;;  %v2610_v6 = vpack.c.bf16 %v1872_v8, %v1871_v5  ;;  %v2000_v5 = vld [vmem:[%s3354_s7 + $0x10] sm:$0xff]  ;;  %v2001_v8 = vld [vmem:[%s3354_s7 + $0x18] sm:$0xff] }
 0xecb   :  { %v2600_v22 = vpack.c.bf16 %v2737_v18, %v2736_v19 }
 0xecc   :  { %v1632_v30 = vpop.permute.xlu1 %1631 }
 0xed0   :  { %v1634_v31 = vpop.permute.xlu1 %1633 }
 0xed3   :  { %v2796_v10 = vpop.eup %2795 }
 0xed4   :  { %v1537_v11 = vsel %vm279_vm5, %v2796_v10, 0.0  ;;  %v2798_v14 = vpop.eup %2797 }
 0xed5   :  { %1538 = vadd.xlane.f32.xlu0 %v1537_v11  ;;  %v1534_v15 = vsel %vm279_vm5, %v2798_v14, 0.0 }
 0xed9   :  { %1535 = vadd.xlane.f32.xlu0 %v1534_v15  ;;  %v1876_v15 = vld [vmem:[%s3352_s5 + $0x28] sm:$0xff] }
 0xeef   :  { %2729 = vrot.lane.b32.xlu0 %v2979_v57, %s2846_s25 }
 0xf62   :  { %v1539_v47 = vpop.xlane.xlu0 %1538 }
 0xf63   :  { %2799 = vrcp.f32 %v1539_v47 }
 0xf66   :  { %v1536_v54 = vpop.xlane.xlu0 %1535 }
 0xf67   :  { %2801 = vrcp.f32 %v1536_v54  ;;  %v1877_v54 = vld [vmem:[%s3352_s5 + $0x30] sm:$0xff] }
 0xf6a   :  { %v2730_v17 = vpop.permute.xlu0 %2729 }
 0xf6b   :  { %v2732_v20 = vunpack.i.h.bf16 %v2730_v17  ;;  %v2731_v21 = vunpack.i.l.bf16 %v2730_v17 }
 0xf6d   :  { %v2596_v53 = vpack.c.bf16 %v2732_v20, %v2731_v21  ;;  %v2800_v23 = vpop.eup %2799 }
 0xf6e   :  { %v1543_v29 = vmul.f32 %v2800_v23, %v2796_v10  ;;  %v1874_v10 = vld [vmem:[%s3352_s5 + $0x18] sm:$0xff] }
 0xf6f   :  { %2597 = vmatprep.subr.bf16.mxu1 %v2596_v53  ;;  %v2614_v11 = vpack.c.bf16 %v1874_v10, %v1873_v9  ;;  %v2630_v9 = vpack.c.bf16 %v2001_v8, %v2000_v5  ;;  %v2093_v10 = vld [vmem:[%s3356_s9 + $0x8] sm:$0xff] }
 0xf70   :  { %2599 = vmatpush3.bf16.msra.mxu1 %v2596_v53 }
 0xf71   :  { %v2802_v24 = vpop.eup %2801  ;;  %2602 = vmatprep.subr.msk.bf16.mxu1 %vm2986_vm3, %v2600_v22 }
 0xf72   :  { %v1542_v26 = vmul.f32 %v2802_v24, %v2798_v14  ;;  %v1875_v14 = vld [vmem:[%s3352_s5 + $0x20] sm:$0xff] }
 0xf73   :  { %v2618_v47 = vpack.c.bf16 %v1876_v15, %v1875_v14 }
 0xf74   :  { %2456 = vmatprep.mubr.msk.f32.mxu1 %vm279_vm5, %v1542_v26 }
 0xf75   :  { %2457 = vmatmul.mubr.msk.f32.vlgmr.msra.gmra.mrb[12].mxu1 %vm279_vm5, %v1543_v29 }
 0xf76   :  { %2463 = vmatprep.mubr.msk.f32.mxu1 %vm175_vm1, %v1632_v30 }
 0xf79   :  { %2605 = vmatpush3.bf16.xpose.msk.msra.mxu1 %vm2986_vm3, %v2600_v22 }
 0xf80   :  { %2464 = vmatmul.mubr.msk.f32.vlgmr.msra.gmra.mrb[14].mxu1 %vm175_vm1, %v1634_v31 }
0x1048   :  { %v2458_v33 = vpop.f32.mrb[12].mxu1 }
0x1049   :  { %v1622_v34 = vpop.f32.mrb[13].mxu1 }
0x1053   :  { %v2465_v35 = vpop.f32.mrb[14].mxu1 }
0x1054   :  { %v1719_v36 = vadd.f32 %v2465_v35, %v3111_v32  ;;  %v1713_v37 = vpop.f32.mrb[15].mxu1 }
0x1055   :  { %v1714_v38 = vadd.f32 %v1713_v37, %v3114_v56 }
0x1056   :  { %v1725_v25 = vsel %vm279_vm5, %v1719_v36, -inf }
0x1057   :  { %1726 = vmax.xlane.f32.xlu1 %v1725_v25  ;;  %v1722_v39 = vsel %vm279_vm5, %v1714_v38, -inf }
0x1058   :  { %1723 = vmax.xlane.f32.xlu0 %v1722_v39  ;;  %v2264_v39 = vld [vmem:[%s3353_s6] ss:$0 sm:$0xff]  ;;  %s2857_s6 = smov [#allocation2]  }
0x1068   :  { %1833 = vrot.lane.b32.xlu1 %v1422_v60, %s2844_s22 }
0x106c   :  { %1835 = vrot.lane.b32.xlu1 %v3164_v51, %s2844_s22 }
0x1070   :  { %1841 = vrot.lane.b32.xlu1 %v1622_v34, %s2856_s18 }
0x10e4   :  { %v1727_v63 = vpop.xlane.xlu1 %1726 }
0x10e5   :  { %v1729_v40 = vsub.f32 %v1719_v36, %v1727_v63  ;;  %v1724_v41 = vpop.xlane.xlu0 %1723  ;;  %v2815_v63 = vld [vmem:[%s3347_s0 + $0x8] sm:$0xff] }
0x10e6   :  { %v1728_v32 = vsub.f32 %v1714_v38, %v1724_v41 }
0x10e7   :  { %v1732_v42 = vmul.f32 1.442695, %v1729_v40 }
0x10e8   :  { %v1730_v43 = vmul.f32 1.442695, %v1728_v32  ;;  %v2816_v32 = vld [vmem:[%s3347_s0] sm:$0xff] }
0x10e9   :  { %2803 = vpow2.f32 %v1732_v42 }
0x10ea   :  { %2805 = vpow2.f32 %v1730_v43 }
0x10f3   :  { %v2804_v56 = vpop.eup %2803 }
0x10f4   :  { %v1737_v46 = vsel %vm279_vm5, %v2804_v56, 0.0  ;;  %v2806_v48 = vpop.eup %2805 }
0x10f5   :  { %1738 = vadd.xlane.f32.xlu0 %v1737_v46  ;;  %v1734_v49 = vsel %vm279_vm5, %v2806_v48, 0.0 }
0x10f9   :  { %1735 = vadd.xlane.f32.xlu0 %v1734_v49 }
0x110f   :  { %2739 = vrot.lane.b32.xlu0 %v2979_v57, %s2850_s29 }
0x1113   :  { %1843 = vrot.lane.b32.xlu0 %v2458_v33, %s2856_s18 }
0x1182   :  { %v1739_v50 = vpop.xlane.xlu0 %1738 }
0x1183   :  { %2807 = vrcp.f32 %v1739_v50 }
0x1186   :  { %v1736_v51 = vpop.xlane.xlu0 %1735 }
0x1187   :  { %2809 = vrcp.f32 %v1736_v51 }
0x118a   :  { %v2740_v60 = vpop.permute.xlu0 %2739 }
0x118b   :  { %v2742_v61 = vunpack.i.h.bf16 %v2740_v60  ;;  %v2741_v62 = vunpack.i.l.bf16 %v2740_v60 }
0x118d   :  { %v2606_v0 = vpack.c.bf16 %v2742_v61, %v2741_v62  ;;  %v2808_v1 = vpop.eup %2807 }
0x118e   :  { %v1743_v4 = vmul.f32 %v2808_v1, %v2804_v56  ;;  %v1844_v18 = vpop.permute.xlu0 %1843 }
0x118f   :  { %2607 = vmatprep.subr.bf16.mxu0 %v2606_v0 }
0x1190   :  { %2609 = vmatpush3.bf16.msra.mxu0 %v2606_v0 }
0x1191   :  { %v2810_v2 = vpop.eup %2809  ;;  %2611 = vmatprep.subr.bf16.mxu0 %v2610_v6 }
0x1192   :  { %v1742_v3 = vmul.f32 %v2810_v2, %v2806_v48 }
0x1194   :  { %2470 = vmatprep.mubr.msk.f32.mxu0 %vm279_vm5, %v1742_v3 }
0x1195   :  { %2471 = vmatmul.mubr.msk.f32.vlgmr.msra.gmra.mrb[18].mxu0 %vm279_vm5, %v1743_v4  ;;  %v1998_v4 = vld [vmem:[%s3354_s7] sm:$0xff] }
0x1196   :  { %2613 = vmatpush3.bf16.msra.mxu0 %v2610_v6  ;;  %v2092_v6 = vld [vmem:[%s3356_s9] sm:$0xff] }
0x1197   :  { %2615 = vmatprep.subr.bf16.mxu0 %v2614_v11 }
0x119a   :  { %2617 = vmatpush3.bf16.msra.mxu0 %v2614_v11  ;;  %v2634_v11 = vpack.c.bf16 %v2093_v10, %v2092_v6 }
0x119b   :  { %2619 = vmatprep.subr.bf16.mxu0 %v2618_v47 }
0x119e   :  { %2621 = vmatpush3.bf16.msra.mxu0 %v2618_v47 }
0x1268   :  { %v2472_v57 = vpop.f32.mrb[18].mxu0 }
0x1269   :  { %1851 = vrot.lane.b32.xlu0 %v2472_v57, %s2855_s2  ;;  %v1822_v7 = vpop.f32.mrb[19].mxu0  ;;  %v1999_v57 = vld [vmem:[%s3354_s7 + $0x8] sm:$0xff] }
0x126a   :  { %1849 = vrot.lane.b32.xlu1 %v1822_v7, %s2855_s2  ;;  %v2626_v7 = vpack.c.bf16 %v1999_v57, %v1998_v4 }
0x126c   :  { %2627 = vmatprep.subr.bf16.mxu1 %v2626_v7 }
0x126d   :  { %993 = vrot.lane.b32.xlu0 %v3034_v44, %s2844_s22  ;;  %v2622_v44 = vpack.c.bf16 %v1878_v16, %v1877_v54  ;;  %2629 = vmatpush3.bf16.msra.mxu1 %v2626_v7 }
0x126e   :  { %991 = vrot.lane.b32.xlu1 %v3036_v45, %s2844_s22  ;;  %v1834_v45 = vpop.permute.xlu1 %1833  ;;  %2631 = vmatprep.subr.bf16.mxu1 %v2630_v9 }
0x126f   :  { %2623 = vmatprep.subr.bf16.mxu0 %v2622_v44 }
0x1270   :  { %2625 = vmatpush3.bf16.msra.mxu0 %v2622_v44 }
0x1271   :  { %1001 = vrot.lane.b32.xlu0 %v3072_v58, %s2856_s18  ;;  %2633 = vmatpush3.bf16.msra.mxu1 %v2630_v9 }
0x1272   :  { %999 = vrot.lane.b32.xlu1 %v3074_v59, %s2856_s18  ;;  %v1836_v17 = vpop.permute.xlu1 %1835  ;;  %v1855_v59 = vsel %vm175_vm1, %v3140_v13, %v1834_v45  ;;  %2635 = vmatprep.subr.bf16.mxu1 %v2634_v11 }
0x1273   :  { %v1856_v58 = vsel %vm175_vm1, %v3138_v12, %v1836_v17 }
0x1274   :  { %v1858_v20 = vsel %vm279_vm5, %v1856_v58, %v1844_v18  ;;  %v2094_v18 = vld [vmem:[%s3356_s9 + $0x10] sm:$0xff] }
0x1275   :  { %1009 = vrot.lane.b32.xlu0 %v3102_v27, %s2855_s2 }
0x1276   :  { %1007 = vrot.lane.b32.xlu1 %v3104_v28, %s2855_s2  ;;  %v1842_v19 = vpop.permute.xlu1 %1841 }
0x1277   :  { %v1857_v21 = vsel %vm279_vm5, %v1855_v59, %v1842_v19  ;;  %v2095_v19 = vld [vmem:[%s3356_s9 + $0x18] sm:$0xff] }
0x12db   :  { %v1852_v27 = vpop.permute.xlu0 %1851 }
0x12dc   :  { %v1850_v53 = vpop.permute.xlu1 %1849  ;;  %v1860_v28 = vsel %vm1017_vm8, %v1858_v20, %v1852_v27  ;;  %v2638_v20 = vpack.c.bf16 %v2095_v19, %v2094_v18  ;;  %v2096_v27 = vld [vmem:[%s3356_s9 + $0x20] sm:$0xff] }
0x12dd   :  { %1865 = vrot.lane.b32.xlu0 %v1860_v28, %s2853_s13  ;;  %v1859_v22 = vsel %vm1017_vm8, %v1857_v21, %v1850_v53  ;;  %v2097_v21 = vld [vmem:[%s3356_s9 + $0x28] sm:$0xff]  ;;  %v2098_v28 = vld [vmem:[%s3356_s9 + $0x30] sm:$0xff] }
0x12de   :  { %1863 = vrot.lane.b32.xlu1 %v1859_v22, %s2853_s13  ;;  %v2642_v53 = vpack.c.bf16 %v2097_v21, %v2096_v27  ;;  %v2099_v22 = vld [vmem:[%s3356_s9 + $0x38] sm:$0xff] }
0x12df   :  { %v994_v23 = vpop.permute.xlu0 %993 }
0x12e0   :  { %v992_v24 = vpop.permute.xlu1 %991  ;;  %v1014_v13 = vsel %vm175_vm1, %v3068_v52, %v994_v23  ;;  %v2646_v23 = vpack.c.bf16 %v2099_v22, %v2098_v28 }
0x12e1   :  { %v1013_v29 = vsel %vm175_vm1, %v3070_v55, %v992_v24  ;;  %v2265_v24 = vld [vmem:[%s3355_s8] ss:$0 sm:$0xff]  ;;  %s2199_s8 = sshll.u32 %s2857_s6, 4  ;;  %s2200_s8 = int_to_ptr.vmem [resolvable:$true] %s2199_s8 }
0x12e2   :  { %s2817_s18 = scalar_lea.vmem %s2200_s8, 256  ;;  %p2822_p1 = scmp.lt.s32.totalorder %s2200_s8, %s2200_s8 }
0x12e3   :  { %v1002_v12 = vpop.permute.xlu0 %1001  ;;  %p2818_p0 = scmp.ne.s32.totalorder %s2200_s8, %s2817_s18  ;;  %p2823_p2 = scmp.lt.s32.totalorder %s2817_s18, %s2817_s18 }
0x12e4   :  { %v1000_v26 = vpop.permute.xlu1 %999  ;;  %v1016_v30 = vsel %vm279_vm5, %v1014_v13, %v1002_v12 }
0x12e5   :  { %v1015_v33 = vsel %vm279_vm5, %v1013_v29, %v1000_v26  ;;  %p2824_p3 = por %p2823_p2, %p2822_p1 }
0x12e7   :  { %v1010_v31 = vpop.permute.xlu0 %1009  ;;  %p2825_p4 = pnand %p2824_p3, %p2818_p0 }
0x12e8   :  { %v1019_v34 = vsel %vm1017_vm8, %v1016_v30, %v1010_v31  ;;  %v1008_v35 = vpop.permute.xlu1 %1007 }
0x12e9   :  { %v1018_v36 = vsel %vm1017_vm8, %v1015_v33, %v1008_v35 }
0x134f   :  { %v1866_v37 = vpop.permute.xlu0 %1865 }
0x1350   :  { %v1864_v38 = vpop.permute.xlu1 %1863  ;;  %v1870_v52 = vsel %vm41_vm0, %v1019_v34, %v1866_v37  ;;  %v2270_v34 = vld [vmem:[%s3357_s10] ss:$0 sm:$0xff] }
0x1351   :  { %v1869_v25 = vsel %vm41_vm0, %v1018_v36, %v1864_v38 }
0x1352   :  { %2489 = vmatprep.mubr.msk.f32.mxu0 %vm1879_vm9, %v1869_v25 }
0x1353   :  { %2490 = vmatmul.mubr.msk.f32.vlgmr.msra.gmra.mrb[20].mxu0 %vm1879_vm9, %v1870_v52 }
0x1426   :  { %v2491_v55 = vpop.f32.mrb[20].mxu0 }
0x1427   :  { %v1962_v40 = vadd.f32 %v2815_v63, %v2491_v55  ;;  %v1952_v41 = vpop.f32.mrb[21].mxu0 }
0x1428   :  { %v1961_v42 = vadd.f32 %v2816_v32, %v1952_v41 }
0x1429   :  { %v3272_v43 = vadd.f32 %v2264_v39, %v1962_v40 }
0x142a   :  { %v3274_v56 = vadd.f32 %v2264_v39, %v1961_v42 }
0x142b   :  { %v1975_v46 = vsel %vm41_vm0, %v3272_v43, 0.0 }
0x142c   :  { %1976 = vadd.xlane.f32.xlu0 %v1975_v46  ;;  %v1972_v48 = vsel %vm41_vm0, %v3274_v56, 0.0 }
0x142d   :  { %1973 = vadd.xlane.f32.xlu1 %v1972_v48 }
0x14b9   :  { %v1977_v49 = vpop.xlane.xlu0 %1976 }
0x14ba   :  { %v1979_v50 = vmul.f32 0.03125, %v1977_v49  ;;  %v1974_v51 = vpop.xlane.xlu1 %1973 }
0x14bb   :  { %v1978_v60 = vmul.f32 0.03125, %v1974_v51 }
0x14bc   :  { %v1981_v61 = vsub.f32 %v3272_v43, %v1979_v50 }
0x14bd   :  { %v1980_v62 = vsub.f32 %v3274_v56, %v1978_v60 }
0x14be   :  { %v1983_v2 = vmul.f32 %v1981_v61, %v1981_v61 }
0x14bf   :  { %v1982_v0 = vmul.f32 %v1980_v62, %v1980_v62 }
0x14c0   :  { %v1987_v3 = vsel %vm41_vm0, %v1983_v2, 0.0 }
0x14c1   :  { %v1984_v1 = vsel %vm41_vm0, %v1982_v0, 0.0 }
0x14c2   :  { %1985 = vadd.xlane.f32.xlu0 %v1984_v1 }
0x14c6   :  { %1988 = vadd.xlane.f32.xlu0 %v1987_v3 }
0x154f   :  { %v1986_v14 = vpop.xlane.xlu0 %1985 }
0x1550   :  { %v1990_v15 = vmul.f32 0.03125, %v1986_v14 }
0x1552   :  { %v1992_v47 = vadd.f32 1e-05, %v1990_v15 }
0x1553   :  { %v1989_v54 = vpop.xlane.xlu0 %1988 }
0x1554   :  { %2811 = vrsqrt.f32 %v1992_v47  ;;  %v1991_v16 = vmul.f32 0.03125, %v1989_v54 }
0x1556   :  { %v1993_v44 = vadd.f32 1e-05, %v1991_v16 }
0x1558   :  { %2813 = vrsqrt.f32 %v1993_v44 }
0x155e   :  { %v2812_v45 = vpop.eup %2811 }
0x155f   :  { %v1996_v17 = vmul.f32 %v2812_v45, %v1980_v62 }
0x1561   :  { %2500 = vmatprep.mubr.msk.f32.mxu1 %vm41_vm0, %v1996_v17 }
0x1562   :  { %v2814_v58 = vpop.eup %2813 }
0x1563   :  { %v1997_v59 = vmul.f32 %v2814_v58, %v1981_v61 }
0x1565   :  { %2501 = vmatmul.mubr.msk.f32.vlgmr.msra.gmra.mrb[16].mxu1 %vm41_vm0, %v1997_v59 }
0x1566   :  { %2637 = vmatpush3.bf16.msra.mxu1 %v2634_v11 }
0x1567   :  { %2639 = vmatprep.subr.bf16.mxu1 %v2638_v20 }
0x156a   :  { %2641 = vmatpush3.bf16.msra.mxu1 %v2638_v20 }
0x156b   :  { %2643 = vmatprep.subr.bf16.mxu1 %v2642_v53 }
0x156e   :  { %2645 = vmatpush3.bf16.msra.mxu1 %v2642_v53 }
0x156f   :  { %2647 = vmatprep.subr.bf16.mxu1 %v2646_v23 }
0x1572   :  { %2649 = vmatpush3.bf16.msra.mxu1 %v2646_v23 }
0x1638   :  { %v2502_v12 = vpop.f32.mrb[16].mxu1 }
0x1639   :  { %v2087_v26 = vadd.f32 %v2502_v12, %v2265_v24  ;;  %v2081_v13 = vpop.f32.mrb[17].mxu1 }
0x163a   :  { %v2082_v29 = vadd.f32 %v2265_v24, %v2081_v13 }
0x163b   :  { %v2091_v31 = vmax.f32 %v2087_v26, 0.0 }
0x163c   :  { %v2090_v30 = vmax.f32 %v2082_v29, 0.0 }
0x163e   :  { %2519 = vmatprep.mubr.msk.f32.mxu1 %vm1879_vm9, %v2090_v30 }
0x163f   :  { %2520 = vmatmul.mubr.msk.f32.vlgmr.msra.gmra.mrb[18].mxu1 %vm1879_vm9, %v2091_v31 }
0x1712   :  { %v2521_v33 = vpop.f32.mrb[18].mxu1 }
0x1713   :  { %v2182_v35 = vadd.f32 %v2521_v33, %v3272_v43  ;;  %v2172_v36 = vpop.f32.mrb[19].mxu1 }
0x1714   :  { %v2181_v37 = vadd.f32 %v2172_v36, %v3274_v56 }
0x1715   :  { %v2191_v38 = vadd.f32 %v2270_v34, %v2182_v35 }
0x1716   :  { %v2190_v25 = vadd.f32 %v2270_v34, %v2181_v37 }
0x1717   :  { %2193 = vst.msk [vmem:[#allocation2 + $0x8] sm:$0xff] %vm41_vm0, %v2191_v38 }
0x1718   :  { %2192 = vst.msk [vmem:[#allocation2] sm:$0xff] %vm41_vm0, %v2190_v25 }
0x1719   :  { %2828 = shalt.err (!%p2825_p4)
}
0x171a   :  { %s2829_s4 = scalar_lea.hbm %s3358_s11, 256 }
0x171b   :  { %p2830_p5 = scmp.ne.s32.totalorder %s3358_s11, %s2829_s4  ;;  %p2833_p6 = scmp.lt.u32.totalorder %s2829_s4, %s3358_s11 }
0x171d   :  { %p2835_p7 = pnand %p2833_p6, %p2830_p5 }
0x171f   :  { %2838 = shalt.err (!%p2835_p7)
}
0x1720   :  { %s2858_s1 = smov 128  }
0x1721   :  { %2205 = dma.vmem_to_hbm [thread:$0]  %s2200_s8, 256, %s3358_s11, [#allocation3], %s2858_s1, %s2858_s1, %s2844_s22  }
0x1722   :  { %2839 = dma.done.wait [#allocation3], 256  }
0x1723   :  { %2840 = vsyncadd [#allocation3], 4294967040 }
0x1724   :  { %2209 = vsyncpa [#allocation3], 1 }

</bundles_post_ra>
